<compile_context>
chip_gen: v6e
topology: v6e:2x2x1
jax: 0.10.0
libtpu: 0.0.40
codegen_flags: <defaults>
</compile_context>

<pallas_src>
import functools

import jax
import jax.numpy as jnp
from jax import lax
from jax.experimental import pallas as pl
from jax.experimental.pallas import tpu as pltpu

_MXU_MIN_CHANNELS = 16  # below this the MXU is badly under-utilised -> VPU path


# ----------------------------------------------------------------------------
# Shift helper: prefer pltpu.roll (runs in the otherwise-idle XLU slot, no VMEM
# copies).  A tiny probe kernel pins down its rotation direction against
# jnp.roll once; if pltpu.roll is unavailable or behaves unexpectedly we fall
# back to jnp.roll (concat-of-slices -- slower, but always correct).
# The returned fn computes, along axis 1:   out[..., i] = x[..., (i + s) % n]
# ----------------------------------------------------------------------------
@functools.cache
def _make_shift_fn():
    try:
        probe = jnp.arange(8 * 256, dtype=jnp.float32).reshape(8, 256)
        probe = probe.astype(jnp.bfloat16)

        def _probe_kernel(x_ref, o_ref):
            o_ref[...] = pltpu.roll(x_ref[...], 3, axis=1)

        got = pl.pallas_call(
            _probe_kernel,
            out_shape=jax.ShapeDtypeStruct((8, 256), jnp.bfloat16),
        )(probe)
        got = jax.block_until_ready(got)
        if bool(jnp.array_equal(got, jnp.roll(probe, 3, axis=1))):
            # jnp.roll convention: out[i] = x[i - shift]  ->  shift = -s.
            return lambda x, s, n: pltpu.roll(x, (-s) % n, axis=1)
        if bool(jnp.array_equal(got, jnp.roll(probe, -3, axis=1))):
            return lambda x, s, n: pltpu.roll(x, s % n, axis=1)
    except Exception:
        pass
    return lambda x, s, n: jnp.roll(x, -s, axis=1)


def _make_resblock_kernel(C, HW, shifts, shift_fn, use_mxu):
    """Kernel for one (C, HW) image plane (channel-major, flattened spatial)."""

    def kernel(x_ref, w_ref, b_ref, mask_ref, o_ref):
        # x_ref   : (C, HW)    bf16  input plane (also the residual)
        # w_ref   : (9, C, C)  bf16  taps [k, c_out, c_in], BN scale folded
        # b_ref   : (C, 1)     f32   folded BN bias
        # mask_ref: (9, 1, HW) bf16  0/1 border masks (the `padding=1` zeros)
        # o_ref   : (C, HW)    bf16  output plane (lane-dense store)
        x = x_ref[...]
        acc = jnp.zeros((C, HW), jnp.float32)
        for k in range(9):
            if k == 4:                      # centre tap: no shift, full mask
                t = x
            else:
                t = shift_fn(x, shifts[k], HW) * mask_ref[k]
            if use_mxu:
                # 9 accumulating (C,C)@(C,HW) MXU matmuls, f32 accumulation.
                acc = acc + jnp.dot(w_ref[k], t,
                                    preferred_element_type=jnp.float32)
            else:
                # Small C: VPU broadcast-FMAs (outer products), f32 accum.
                wk = w_ref[k].astype(jnp.float32)        # (C, C)
                t32 = t.astype(jnp.float32)              # (C, HW)
                for ci in range(C):
                    acc = acc + wk[:, ci:ci + 1] * t32[ci:ci + 1, :]
        y = jnp.maximum(acc + b_ref[...], 0.0)           # BN bias + ReLU (f32)
        o_ref[...] = (x.astype(jnp.float32) + y).astype(o_ref.dtype)

    return kernel


def resblock_nchw(x_nchw, w_hwio, gamma, beta, running_mean, running_var,
                  eps=1e-5):
    """ResBlock forward.  x: (N, C, H, W); w_hwio: (3, 3, C_in, C_out);
    BN params: (C,).  Returns an array with x's shape and dtype."""
    N, C, H, W = x_nchw.shape
    HW = H * W

    # Fold eval-mode BatchNorm: per-output-channel scale into the conv
    # weights; the remaining bias is applied in-kernel in f32.
    scale = gamma / jnp.sqrt(running_var + eps)
    bias = (beta - running_mean * scale).reshape(C, 1).astype(jnp.float32)
    w_scaled = w_hwio * scale[None, None, None, :]            # (3,3,Cin,Cout)
    w_packed = jnp.transpose(w_scaled, (0, 1, 3, 2))           # (3,3,Cout,Cin)
    w_packed = w_packed.reshape(9, C, C).astype(jnp.bfloat16)  # [k, co, ci]

    # Flattened-spatial border masks + shifts for the 9 taps (replaces any
    # padded scratch: masked-out lanes are exactly the `padding=1` zeros).
    hh = jnp.arange(H).reshape(H, 1)
    ww = jnp.arange(W).reshape(1, W)
    masks, shifts = [], []
    for dh in (-1, 0, 1):
        for dw in (-1, 0, 1):
            valid = ((hh + dh >= 0) & (hh + dh < H) &
                     (ww + dw >= 0) & (ww + dw < W))
            masks.append(valid.reshape(1, HW))
            shifts.append(dh * W + dw)
    mask_arr = jnp.stack(masks, axis=0).astype(jnp.bfloat16)   # (9, 1, HW)

    # Lane-dense input: NCHW -> (N, C, H*W) is a free reshape (no transpose),
    # quantised to bf16 at the HBM boundary.
    x_flat = x_nchw.reshape(N, C, HW).astype(jnp.bfloat16)

    # VMEM budget: derive the limit from the hardware and check the per-image
    # working set fits (one image per grid step).
    try:
        vmem_cap = int(pltpu.get_tpu_info().vmem_capacity_bytes)
    except Exception:
        vmem_cap = 64 * 1024 * 1024           # conservative (v7x per-core VMEM)
    vmem_limit = int(vmem_cap * 0.8)          # headroom for compiler scratch
    plane_elems = C * HW
    est_block_vmem = (
        2 * 2 * plane_elems * 2               # bf16 in + out blocks, 2x-buffered
        + 6 * plane_elems * 4                 # f32 temporaries (acc, tap, ...)
        + 2 * (9 * C * C * 2 + 9 * HW * 2 + C * 4)   # weights / masks / bias
    )
    if est_block_vmem > vmem_limit:
        # TODO(synk): spatial (H) tiling with halo handling for huge C*H*W.
        raise ValueError(
            f"per-image working set (~{est_block_vmem} B) exceeds the VMEM "
            f"budget ({vmem_limit} B); spatial tiling not implemented")

    use_mxu = C >= _MXU_MIN_CHANNELS
    shift_fn = _make_shift_fn()
    kernel = _make_resblock_kernel(C, HW, shifts, shift_fn, use_mxu)

    cost = pl.CostEstimate(
        flops=2 * 9 * C * C * HW * N,
        transcendentals=0,
        bytes_accessed=(2 * N * C * HW * 2            # bf16 in + bf16 out
                        + 9 * C * C * 2 + 9 * HW * 2 + C * 4),
    )

    out_flat = pl.pallas_call(
        kernel,
        out_shape=jax.ShapeDtypeStruct((N, C, HW), jnp.bfloat16),
        grid_spec=pltpu.PrefetchScalarGridSpec(
            num_scalar_prefetch=0,
            grid=(N,),
            in_specs=[
                pl.BlockSpec((None, C, HW), lambda n: (n, 0, 0)),   # x
                pl.BlockSpec((9, C, C), lambda n: (0, 0, 0)),       # weights
                pl.BlockSpec((C, 1), lambda n: (0, 0)),             # bias
                pl.BlockSpec((9, 1, HW), lambda n: (0, 0, 0)),      # masks
            ],
            out_specs=pl.BlockSpec((None, C, HW), lambda n: (n, 0, 0)),
        ),
        compiler_params=pltpu.CompilerParams(
            dimension_semantics=("parallel",),
            vmem_limit_bytes=vmem_limit,
        ),
        cost_estimate=cost,
    )(x_flat, w_packed, bias, mask_arr)

    # bf16 at the HBM boundary; match the caller's dtype on the way out.
    return out_flat.reshape(N, C, H, W).astype(x_nchw.dtype)


def _reference_nchw(x_nchw, w_hwio, gamma, beta, running_mean, running_var,
                    eps=1e-5):
    """Pure-JAX reference mirroring the kernel's bf16 quantisation of the
    activations, scale-folded weights and output (f32 conv/BN/ReLU/residual)."""
    scale = gamma / jnp.sqrt(running_var + eps)
    bias = beta - running_mean * scale
    x_nhwc = jnp.transpose(x_nchw, (0, 2, 3, 1))
    x_q = x_nhwc.astype(jnp.bfloat16).astype(jnp.float32)
    w_q = (w_hwio * scale[None, None, None, :]).astype(jnp.bfloat16)
    w_q = w_q.astype(jnp.float32)
    y = lax.conv_general_dilated(
        x_q, w_q, window_strides=(1, 1), padding="SAME",
        dimension_numbers=("NHWC", "HWIO", "NHWC"))
    y = jnp.maximum(y + bias, 0.0)
    out = (x_q + y).astype(jnp.bfloat16).astype(jnp.float32)
    return jnp.transpose(out, (0, 3, 1, 2)).astype(x_nchw.dtype)


if __name__ == "__main__":
    key = jax.random.PRNGKey(0)
    k_x, k_w, k_g, k_b, k_m, k_v = jax.random.split(key, 6)

    N, C, H, W = 2, 4, 16, 16          # nf = 4
    x = jax.random.normal(k_x, (N, C, H, W), jnp.float32)
    w_hwio = jax.random.normal(k_w, (3, 3, C, C), jnp.float32) * 0.1
    gamma = 1.0 + 0.1 * jax.random.normal(k_g, (C,), jnp.float32)
    beta = 0.1 * jax.random.normal(k_b, (C,), jnp.float32)
    running_mean = 0.1 * jax.random.normal(k_m, (C,), jnp.float32)
    running_var = jnp.abs(jax.random.normal(k_v, (C,), jnp.float32)) + 0.5

    out = resblock_nchw(x, w_hwio, gamma, beta, running_mean, running_var)
    out = jax.block_until_ready(out)

    ref = _reference_nchw(x, w_hwio, gamma, beta, running_mean, running_var)
    assert out.shape == (N, C, H, W)
    assert out.dtype == x.dtype
    max_err = float(jnp.max(jnp.abs(out - ref)))
    assert jnp.allclose(out, ref, atol=2e-2, rtol=2e-2), (
        f"mismatch vs reference, max abs err = {max_err}")

    print("KERNEL_OK")
</pallas_src>

<mosaic_0001>
module attributes {stable_mosaic.version = 11 : i64} {
  func.func @_probe_kernel(%arg0: memref<8x256xbf16, #tpu.memory_space<vmem>>, %arg1: memref<8x256xbf16, #tpu.memory_space<vmem>>) attributes {dimension_semantics = [], scalar_prefetch = 0 : i64, scratch_operands = 0 : i64, tpu.core_type = #tpu.core_type<tc>} {
    %c0 = arith.constant 0 : index
    %c0_0 = arith.constant 0 : index
    %0 = vector.load %arg0[%c0, %c0_0] : memref<8x256xbf16, #tpu.memory_space<vmem>>, vector<8x256xbf16>
    %c3_i32 = arith.constant 3 : i32
    %1 = tpu.dynamic_rotate %0 by %c3_i32 dim 1 : vector<8x256xbf16>, i32 -> vector<8x256xbf16>
    %c0_1 = arith.constant 0 : index
    %c0_2 = arith.constant 0 : index
    %2 = vector.load %arg1[%c0_1, %c0_2] : memref<8x256xbf16, #tpu.memory_space<vmem>>, vector<8x256xbf16>
    tpu.vector_store %arg1[%c0_1, %c0_2], %1 {strides = array<i32>} : memref<8x256xbf16, #tpu.memory_space<vmem>>, vector<8x256xbf16>,
    return
  }
}

module attributes {stable_mosaic.version = 11 : i64} {
  func.func @kernel(%arg0: i32, %arg1: memref<1x4x256xbf16, #tpu.memory_space<vmem>>, %arg2: memref<9x4x4xbf16, #tpu.memory_space<vmem>>, %arg3: memref<4x1xf32, #tpu.memory_space<vmem>>, %arg4: memref<9x1x256xbf16, #tpu.memory_space<vmem>>, %arg5: memref<1x4x256xbf16, #tpu.memory_space<vmem>>) attributes {dimension_semantics = [#tpu.dimension_semantics<parallel>], iteration_bounds = array<i64: 2>, scalar_prefetch = 0 : i64, scratch_operands = 0 : i64, tpu.core_type = #tpu.core_type<tc>, window_params = [{transform_indices = @transform_0, window_bounds = array<i64: 1, 4, 256>}, {pipeline_mode = #tpu.pipeline_mode<synchronous>, transform_indices = @transform_1, window_bounds = array<i64: 9, 4, 4>}, {pipeline_mode = #tpu.pipeline_mode<synchronous>, transform_indices = @transform_2, window_bounds = array<i64: 4, 1>}, {pipeline_mode = #tpu.pipeline_mode<synchronous>, transform_indices = @transform_3, window_bounds = array<i64: 9, 1, 256>}, {transform_indices = @transform_4, window_bounds = array<i64: 1, 4, 256>}]} {
    %c0 = arith.constant 0 : index
    %c0_0 = arith.constant 0 : index
    %c0_1 = arith.constant 0 : index
    %0 = vector.load %arg1[%c0, %c0_0, %c0_1] : memref<1x4x256xbf16, #tpu.memory_space<vmem>>, vector<1x4x256xbf16>
    %1 = vector.shape_cast %0 : vector<1x4x256xbf16> to vector<4x256xbf16>
    %cst = arith.constant 0.000000e+00 : f32
    %2 = vector.broadcast %cst : f32 to vector<4x256xf32>
    %3 = vector.extract_strided_slice %1 {offsets = [0, 239], sizes = [4, 17], strides = [1, 1]} : vector<4x256xbf16> to vector<4x17xbf16>
    %4 = vector.extract_strided_slice %1 {offsets = [0, 0], sizes = [4, 239], strides = [1, 1]} : vector<4x256xbf16> to vector<4x239xbf16>
    %5 = tpu.concatenate %3, %4 in 1 : vector<4x17xbf16>, vector<4x239xbf16> -> vector<4x256xbf16>
    %c0_2 = arith.constant 0 : index
    %c0_3 = arith.constant 0 : index
    %c0_4 = arith.constant 0 : index
    %6 = vector.load %arg4[%c0_2, %c0_3, %c0_4] : memref<9x1x256xbf16, #tpu.memory_space<vmem>>, vector<1x1x256xbf16>
    %7 = vector.shape_cast %6 : vector<1x1x256xbf16> to vector<1x256xbf16>
    %8 = vector.broadcast %7 : vector<1x256xbf16> to vector<4x256xbf16>
    %9 = arith.mulf %5, %8 : vector<4x256xbf16>
    %c0_5 = arith.constant 0 : index
    %c0_6 = arith.constant 0 : index
    %c0_7 = arith.constant 0 : index
    %10 = vector.load %arg2[%c0_5, %c0_6, %c0_7] : memref<9x4x4xbf16, #tpu.memory_space<vmem>>, vector<1x4x4xbf16>
    %11 = vector.shape_cast %10 : vector<1x4x4xbf16> to vector<4x4xbf16>
    %12 = arith.extf %11 : vector<4x4xbf16> to vector<4x4xf32>
    %13 = arith.extf %9 : vector<4x256xbf16> to vector<4x256xf32>
    %14 = vector.extract_strided_slice %12 {offsets = [0, 0], sizes = [4, 1], strides = [1, 1]} : vector<4x4xf32> to vector<4x1xf32>
    %15 = vector.extract_strided_slice %13 {offsets = [0, 0], sizes = [1, 256], strides = [1, 1]} : vector<4x256xf32> to vector<1x256xf32>
    %16 = vector.broadcast %14 : vector<4x1xf32> to vector<4x256xf32>
    %17 = vector.broadcast %15 : vector<1x256xf32> to vector<4x256xf32>
    %18 = arith.mulf %16, %17 : vector<4x256xf32>
    %19 = arith.addf %2, %18 : vector<4x256xf32>
    %20 = vector.extract_strided_slice %12 {offsets = [0, 1], sizes = [4, 1], strides = [1, 1]} : vector<4x4xf32> to vector<4x1xf32>
    %21 = vector.extract_strided_slice %13 {offsets = [1, 0], sizes = [1, 256], strides = [1, 1]} : vector<4x256xf32> to vector<1x256xf32>
    %22 = vector.broadcast %20 : vector<4x1xf32> to vector<4x256xf32>
    %23 = vector.broadcast %21 : vector<1x256xf32> to vector<4x256xf32>
    %24 = arith.mulf %22, %23 : vector<4x256xf32>
    %25 = arith.addf %19, %24 : vector<4x256xf32>
    %26 = vector.extract_strided_slice %12 {offsets = [0, 2], sizes = [4, 1], strides = [1, 1]} : vector<4x4xf32> to vector<4x1xf32>
    %27 = vector.extract_strided_slice %13 {offsets = [2, 0], sizes = [1, 256], strides = [1, 1]} : vector<4x256xf32> to vector<1x256xf32>
    %28 = vector.broadcast %26 : vector<4x1xf32> to vector<4x256xf32>
    %29 = vector.broadcast %27 : vector<1x256xf32> to vector<4x256xf32>
    %30 = arith.mulf %28, %29 : vector<4x256xf32>
    %31 = arith.addf %25, %30 : vector<4x256xf32>
    %32 = vector.extract_strided_slice %12 {offsets = [0, 3], sizes = [4, 1], strides = [1, 1]} : vector<4x4xf32> to vector<4x1xf32>
    %33 = vector.extract_strided_slice %13 {offsets = [3, 0], sizes = [1, 256], strides = [1, 1]} : vector<4x256xf32> to vector<1x256xf32>
    %34 = vector.broadcast %32 : vector<4x1xf32> to vector<4x256xf32>
    %35 = vector.broadcast %33 : vector<1x256xf32> to vector<4x256xf32>
    %36 = arith.mulf %34, %35 : vector<4x256xf32>
    %37 = arith.addf %31, %36 : vector<4x256xf32>
    %38 = vector.extract_strided_slice %1 {offsets = [0, 240], sizes = [4, 16], strides = [1, 1]} : vector<4x256xbf16> to vector<4x16xbf16>
    %39 = vector.extract_strided_slice %1 {offsets = [0, 0], sizes = [4, 240], strides = [1, 1]} : vector<4x256xbf16> to vector<4x240xbf16>
    %40 = tpu.concatenate %38, %39 in 1 : vector<4x16xbf16>, vector<4x240xbf16> -> vector<4x256xbf16>
    %c1 = arith.constant 1 : index
    %c0_8 = arith.constant 0 : index
    %c0_9 = arith.constant 0 : index
    %41 = vector.load %arg4[%c1, %c0_8, %c0_9] : memref<9x1x256xbf16, #tpu.memory_space<vmem>>, vector<1x1x256xbf16>
    %42 = vector.shape_cast %41 : vector<1x1x256xbf16> to vector<1x256xbf16>
    %43 = vector.broadcast %42 : vector<1x256xbf16> to vector<4x256xbf16>
    %44 = arith.mulf %40, %43 : vector<4x256xbf16>
    %c1_10 = arith.constant 1 : index
    %c0_11 = arith.constant 0 : index
    %c0_12 = arith.constant 0 : index
    %45 = vector.load %arg2[%c1_10, %c0_11, %c0_12] : memref<9x4x4xbf16, #tpu.memory_space<vmem>>, vector<1x4x4xbf16>
    %46 = vector.shape_cast %45 : vector<1x4x4xbf16> to vector<4x4xbf16>
    %47 = arith.extf %46 : vector<4x4xbf16> to vector<4x4xf32>
    %48 = arith.extf %44 : vector<4x256xbf16> to vector<4x256xf32>
    %49 = vector.extract_strided_slice %47 {offsets = [0, 0], sizes = [4, 1], strides = [1, 1]} : vector<4x4xf32> to vector<4x1xf32>
    %50 = vector.extract_strided_slice %48 {offsets = [0, 0], sizes = [1, 256], strides = [1, 1]} : vector<4x256xf32> to vector<1x256xf32>
    %51 = vector.broadcast %49 : vector<4x1xf32> to vector<4x256xf32>
    %52 = vector.broadcast %50 : vector<1x256xf32> to vector<4x256xf32>
    %53 = arith.mulf %51, %52 : vector<4x256xf32>
    %54 = arith.addf %37, %53 : vector<4x256xf32>
    %55 = vector.extract_strided_slice %47 {offsets = [0, 1], sizes = [4, 1], strides = [1, 1]} : vector<4x4xf32> to vector<4x1xf32>
    %56 = vector.extract_strided_slice %48 {offsets = [1, 0], sizes = [1, 256], strides = [1, 1]} : vector<4x256xf32> to vector<1x256xf32>
    %57 = vector.broadcast %55 : vector<4x1xf32> to vector<4x256xf32>
    %58 = vector.broadcast %56 : vector<1x256xf32> to vector<4x256xf32>
    %59 = arith.mulf %57, %58 : vector<4x256xf32>
    %60 = arith.addf %54, %59 : vector<4x256xf32>
    %61 = vector.extract_strided_slice %47 {offsets = [0, 2], sizes = [4, 1], strides = [1, 1]} : vector<4x4xf32> to vector<4x1xf32>
    %62 = vector.extract_strided_slice %48 {offsets = [2, 0], sizes = [1, 256], strides = [1, 1]} : vector<4x256xf32> to vector<1x256xf32>
    %63 = vector.broadcast %61 : vector<4x1xf32> to vector<4x256xf32>
    %64 = vector.broadcast %62 : vector<1x256xf32> to vector<4x256xf32>
    %65 = arith.mulf %63, %64 : vector<4x256xf32>
    %66 = arith.addf %60, %65 : vector<4x256xf32>
    %67 = vector.extract_strided_slice %47 {offsets = [0, 3], sizes = [4, 1], strides = [1, 1]} : vector<4x4xf32> to vector<4x1xf32>
    %68 = vector.extract_strided_slice %48 {offsets = [3, 0], sizes = [1, 256], strides = [1, 1]} : vector<4x256xf32> to vector<1x256xf32>
    %69 = vector.broadcast %67 : vector<4x1xf32> to vector<4x256xf32>
    %70 = vector.broadcast %68 : vector<1x256xf32> to vector<4x256xf32>
    %71 = arith.mulf %69, %70 : vector<4x256xf32>
    %72 = arith.addf %66, %71 : vector<4x256xf32>
    %73 = vector.extract_strided_slice %1 {offsets = [0, 241], sizes = [4, 15], strides = [1, 1]} : vector<4x256xbf16> to vector<4x15xbf16>
    %74 = vector.extract_strided_slice %1 {offsets = [0, 0], sizes = [4, 241], strides = [1, 1]} : vector<4x256xbf16> to vector<4x241xbf16>
    %75 = tpu.concatenate %73, %74 in 1 : vector<4x15xbf16>, vector<4x241xbf16> -> vector<4x256xbf16>
    %c2 = arith.constant 2 : index
    %c0_13 = arith.constant 0 : index
    %c0_14 = arith.constant 0 : index
    %76 = vector.load %arg4[%c2, %c0_13, %c0_14] : memref<9x1x256xbf16, #tpu.memory_space<vmem>>, vector<1x1x256xbf16>
    %77 = vector.shape_cast %76 : vector<1x1x256xbf16> to vector<1x256xbf16>
    %78 = vector.broadcast %77 : vector<1x256xbf16> to vector<4x256xbf16>
    %79 = arith.mulf %75, %78 : vector<4x256xbf16>
    %c2_15 = arith.constant 2 : index
    %c0_16 = arith.constant 0 : index
    %c0_17 = arith.constant 0 : index
    %80 = vector.load %arg2[%c2_15, %c0_16, %c0_17] : memref<9x4x4xbf16, #tpu.memory_space<vmem>>, vector<1x4x4xbf16>
    %81 = vector.shape_cast %80 : vector<1x4x4xbf16> to vector<4x4xbf16>
    %82 = arith.extf %81 : vector<4x4xbf16> to vector<4x4xf32>
    %83 = arith.extf %79 : vector<4x256xbf16> to vector<4x256xf32>
    %84 = vector.extract_strided_slice %82 {offsets = [0, 0], sizes = [4, 1], strides = [1, 1]} : vector<4x4xf32> to vector<4x1xf32>
    %85 = vector.extract_strided_slice %83 {offsets = [0, 0], sizes = [1, 256], strides = [1, 1]} : vector<4x256xf32> to vector<1x256xf32>
    %86 = vector.broadcast %84 : vector<4x1xf32> to vector<4x256xf32>
    %87 = vector.broadcast %85 : vector<1x256xf32> to vector<4x256xf32>
    %88 = arith.mulf %86, %87 : vector<4x256xf32>
    %89 = arith.addf %72, %88 : vector<4x256xf32>
    %90 = vector.extract_strided_slice %82 {offsets = [0, 1], sizes = [4, 1], strides = [1, 1]} : vector<4x4xf32> to vector<4x1xf32>
    %91 = vector.extract_strided_slice %83 {offsets = [1, 0], sizes = [1, 256], strides = [1, 1]} : vector<4x256xf32> to vector<1x256xf32>
    %92 = vector.broadcast %90 : vector<4x1xf32> to vector<4x256xf32>
    %93 = vector.broadcast %91 : vector<1x256xf32> to vector<4x256xf32>
    %94 = arith.mulf %92, %93 : vector<4x256xf32>
    %95 = arith.addf %89, %94 : vector<4x256xf32>
    %96 = vector.extract_strided_slice %82 {offsets = [0, 2], sizes = [4, 1], strides = [1, 1]} : vector<4x4xf32> to vector<4x1xf32>
    %97 = vector.extract_strided_slice %83 {offsets = [2, 0], sizes = [1, 256], strides = [1, 1]} : vector<4x256xf32> to vector<1x256xf32>
    %98 = vector.broadcast %96 : vector<4x1xf32> to vector<4x256xf32>
    %99 = vector.broadcast %97 : vector<1x256xf32> to vector<4x256xf32>
    %100 = arith.mulf %98, %99 : vector<4x256xf32>
    %101 = arith.addf %95, %100 : vector<4x256xf32>
    %102 = vector.extract_strided_slice %82 {offsets = [0, 3], sizes = [4, 1], strides = [1, 1]} : vector<4x4xf32> to vector<4x1xf32>
    %103 = vector.extract_strided_slice %83 {offsets = [3, 0], sizes = [1, 256], strides = [1, 1]} : vector<4x256xf32> to vector<1x256xf32>
    %104 = vector.broadcast %102 : vector<4x1xf32> to vector<4x256xf32>
    %105 = vector.broadcast %103 : vector<1x256xf32> to vector<4x256xf32>
    %106 = arith.mulf %104, %105 : vector<4x256xf32>
    %107 = arith.addf %101, %106 : vector<4x256xf32>
    %108 = vector.extract_strided_slice %1 {offsets = [0, 255], sizes = [4, 1], strides = [1, 1]} : vector<4x256xbf16> to vector<4x1xbf16>
    %109 = vector.extract_strided_slice %1 {offsets = [0, 0], sizes = [4, 255], strides = [1, 1]} : vector<4x256xbf16> to vector<4x255xbf16>
    %110 = tpu.concatenate %108, %109 in 1 : vector<4x1xbf16>, vector<4x255xbf16> -> vector<4x256xbf16>
    %c3 = arith.constant 3 : index
    %c0_18 = arith.constant 0 : index
    %c0_19 = arith.constant 0 : index
    %111 = vector.load %arg4[%c3, %c0_18, %c0_19] : memref<9x1x256xbf16, #tpu.memory_space<vmem>>, vector<1x1x256xbf16>
    %112 = vector.shape_cast %111 : vector<1x1x256xbf16> to vector<1x256xbf16>
    %113 = vector.broadcast %112 : vector<1x256xbf16> to vector<4x256xbf16>
    %114 = arith.mulf %110, %113 : vector<4x256xbf16>
    %c3_20 = arith.constant 3 : index
    %c0_21 = arith.constant 0 : index
    %c0_22 = arith.constant 0 : index
    %115 = vector.load %arg2[%c3_20, %c0_21, %c0_22] : memref<9x4x4xbf16, #tpu.memory_space<vmem>>, vector<1x4x4xbf16>
    %116 = vector.shape_cast %115 : vector<1x4x4xbf16> to vector<4x4xbf16>
    %117 = arith.extf %116 : vector<4x4xbf16> to vector<4x4xf32>
    %118 = arith.extf %114 : vector<4x256xbf16> to vector<4x256xf32>
    %119 = vector.extract_strided_slice %117 {offsets = [0, 0], sizes = [4, 1], strides = [1, 1]} : vector<4x4xf32> to vector<4x1xf32>
    %120 = vector.extract_strided_slice %118 {offsets = [0, 0], sizes = [1, 256], strides = [1, 1]} : vector<4x256xf32> to vector<1x256xf32>
    %121 = vector.broadcast %119 : vector<4x1xf32> to vector<4x256xf32>
    %122 = vector.broadcast %120 : vector<1x256xf32> to vector<4x256xf32>
    %123 = arith.mulf %121, %122 : vector<4x256xf32>
    %124 = arith.addf %107, %123 : vector<4x256xf32>
    %125 = vector.extract_strided_slice %117 {offsets = [0, 1], sizes = [4, 1], strides = [1, 1]} : vector<4x4xf32> to vector<4x1xf32>
    %126 = vector.extract_strided_slice %118 {offsets = [1, 0], sizes = [1, 256], strides = [1, 1]} : vector<4x256xf32> to vector<1x256xf32>
    %127 = vector.broadcast %125 : vector<4x1xf32> to vector<4x256xf32>
    %128 = vector.broadcast %126 : vector<1x256xf32> to vector<4x256xf32>
    %129 = arith.mulf %127, %128 : vector<4x256xf32>
    %130 = arith.addf %124, %129 : vector<4x256xf32>
    %131 = vector.extract_strided_slice %117 {offsets = [0, 2], sizes = [4, 1], strides = [1, 1]} : vector<4x4xf32> to vector<4x1xf32>
    %132 = vector.extract_strided_slice %118 {offsets = [2, 0], sizes = [1, 256], strides = [1, 1]} : vector<4x256xf32> to vector<1x256xf32>
    %133 = vector.broadcast %131 : vector<4x1xf32> to vector<4x256xf32>
    %134 = vector.broadcast %132 : vector<1x256xf32> to vector<4x256xf32>
    %135 = arith.mulf %133, %134 : vector<4x256xf32>
    %136 = arith.addf %130, %135 : vector<4x256xf32>
    %137 = vector.extract_strided_slice %117 {offsets = [0, 3], sizes = [4, 1], strides = [1, 1]} : vector<4x4xf32> to vector<4x1xf32>
    %138 = vector.extract_strided_slice %118 {offsets = [3, 0], sizes = [1, 256], strides = [1, 1]} : vector<4x256xf32> to vector<1x256xf32>
    %139 = vector.broadcast %137 : vector<4x1xf32> to vector<4x256xf32>
    %140 = vector.broadcast %138 : vector<1x256xf32> to vector<4x256xf32>
    %141 = arith.mulf %139, %140 : vector<4x256xf32>
    %142 = arith.addf %136, %141 : vector<4x256xf32>
    %c4 = arith.constant 4 : index
    %c0_23 = arith.constant 0 : index
    %c0_24 = arith.constant 0 : index
    %143 = vector.load %arg2[%c4, %c0_23, %c0_24] : memref<9x4x4xbf16, #tpu.memory_space<vmem>>, vector<1x4x4xbf16>
    %144 = vector.shape_cast %143 : vector<1x4x4xbf16> to vector<4x4xbf16>
    %145 = arith.extf %144 : vector<4x4xbf16> to vector<4x4xf32>
    %146 = arith.extf %1 : vector<4x256xbf16> to vector<4x256xf32>
    %147 = vector.extract_strided_slice %145 {offsets = [0, 0], sizes = [4, 1], strides = [1, 1]} : vector<4x4xf32> to vector<4x1xf32>
    %148 = vector.extract_strided_slice %146 {offsets = [0, 0], sizes = [1, 256], strides = [1, 1]} : vector<4x256xf32> to vector<1x256xf32>
    %149 = vector.broadcast %147 : vector<4x1xf32> to vector<4x256xf32>
    %150 = vector.broadcast %148 : vector<1x256xf32> to vector<4x256xf32>
    %151 = arith.mulf %149, %150 : vector<4x256xf32>
    %152 = arith.addf %142, %151 : vector<4x256xf32>
    %153 = vector.extract_strided_slice %145 {offsets = [0, 1], sizes = [4, 1], strides = [1, 1]} : vector<4x4xf32> to vector<4x1xf32>
    %154 = vector.extract_strided_slice %146 {offsets = [1, 0], sizes = [1, 256], strides = [1, 1]} : vector<4x256xf32> to vector<1x256xf32>
    %155 = vector.broadcast %153 : vector<4x1xf32> to vector<4x256xf32>
    %156 = vector.broadcast %154 : vector<1x256xf32> to vector<4x256xf32>
    %157 = arith.mulf %155, %156 : vector<4x256xf32>
    %158 = arith.addf %152, %157 : vector<4x256xf32>
    %159 = vector.extract_strided_slice %145 {offsets = [0, 2], sizes = [4, 1], strides = [1, 1]} : vector<4x4xf32> to vector<4x1xf32>
    %160 = vector.extract_strided_slice %146 {offsets = [2, 0], sizes = [1, 256], strides = [1, 1]} : vector<4x256xf32> to vector<1x256xf32>
    %161 = vector.broadcast %159 : vector<4x1xf32> to vector<4x256xf32>
    %162 = vector.broadcast %160 : vector<1x256xf32> to vector<4x256xf32>
    %163 = arith.mulf %161, %162 : vector<4x256xf32>
    %164 = arith.addf %158, %163 : vector<4x256xf32>
    %165 = vector.extract_strided_slice %145 {offsets = [0, 3], sizes = [4, 1], strides = [1, 1]} : vector<4x4xf32> to vector<4x1xf32>
    %166 = vector.extract_strided_slice %146 {offsets = [3, 0], sizes = [1, 256], strides = [1, 1]} : vector<4x256xf32> to vector<1x256xf32>
    %167 = vector.broadcast %165 : vector<4x1xf32> to vector<4x256xf32>
    %168 = vector.broadcast %166 : vector<1x256xf32> to vector<4x256xf32>
    %169 = arith.mulf %167, %168 : vector<4x256xf32>
    %170 = arith.addf %164, %169 : vector<4x256xf32>
    %171 = vector.extract_strided_slice %1 {offsets = [0, 1], sizes = [4, 255], strides = [1, 1]} : vector<4x256xbf16> to vector<4x255xbf16>
    %172 = vector.extract_strided_slice %1 {offsets = [0, 0], sizes = [4, 1], strides = [1, 1]} : vector<4x256xbf16> to vector<4x1xbf16>
    %173 = tpu.concatenate %171, %172 in 1 : vector<4x255xbf16>, vector<4x1xbf16> -> vector<4x256xbf16>
    %c5 = arith.constant 5 : index
    %c0_25 = arith.constant 0 : index
    %c0_26 = arith.constant 0 : index
    %174 = vector.load %arg4[%c5, %c0_25, %c0_26] : memref<9x1x256xbf16, #tpu.memory_space<vmem>>, vector<1x1x256xbf16>
    %175 = vector.shape_cast %174 : vector<1x1x256xbf16> to vector<1x256xbf16>
    %176 = vector.broadcast %175 : vector<1x256xbf16> to vector<4x256xbf16>
    %177 = arith.mulf %173, %176 : vector<4x256xbf16>
    %c5_27 = arith.constant 5 : index
    %c0_28 = arith.constant 0 : index
    %c0_29 = arith.constant 0 : index
    %178 = vector.load %arg2[%c5_27, %c0_28, %c0_29] : memref<9x4x4xbf16, #tpu.memory_space<vmem>>, vector<1x4x4xbf16>
    %179 = vector.shape_cast %178 : vector<1x4x4xbf16> to vector<4x4xbf16>
    %180 = arith.extf %179 : vector<4x4xbf16> to vector<4x4xf32>
    %181 = arith.extf %177 : vector<4x256xbf16> to vector<4x256xf32>
    %182 = vector.extract_strided_slice %180 {offsets = [0, 0], sizes = [4, 1], strides = [1, 1]} : vector<4x4xf32> to vector<4x1xf32>
    %183 = vector.extract_strided_slice %181 {offsets = [0, 0], sizes = [1, 256], strides = [1, 1]} : vector<4x256xf32> to vector<1x256xf32>
    %184 = vector.broadcast %182 : vector<4x1xf32> to vector<4x256xf32>
    %185 = vector.broadcast %183 : vector<1x256xf32> to vector<4x256xf32>
    %186 = arith.mulf %184, %185 : vector<4x256xf32>
    %187 = arith.addf %170, %186 : vector<4x256xf32>
    %188 = vector.extract_strided_slice %180 {offsets = [0, 1], sizes = [4, 1], strides = [1, 1]} : vector<4x4xf32> to vector<4x1xf32>
    %189 = vector.extract_strided_slice %181 {offsets = [1, 0], sizes = [1, 256], strides = [1, 1]} : vector<4x256xf32> to vector<1x256xf32>
    %190 = vector.broadcast %188 : vector<4x1xf32> to vector<4x256xf32>
    %191 = vector.broadcast %189 : vector<1x256xf32> to vector<4x256xf32>
    %192 = arith.mulf %190, %191 : vector<4x256xf32>
    %193 = arith.addf %187, %192 : vector<4x256xf32>
    %194 = vector.extract_strided_slice %180 {offsets = [0, 2], sizes = [4, 1], strides = [1, 1]} : vector<4x4xf32> to vector<4x1xf32>
    %195 = vector.extract_strided_slice %181 {offsets = [2, 0], sizes = [1, 256], strides = [1, 1]} : vector<4x256xf32> to vector<1x256xf32>
    %196 = vector.broadcast %194 : vector<4x1xf32> to vector<4x256xf32>
    %197 = vector.broadcast %195 : vector<1x256xf32> to vector<4x256xf32>
    %198 = arith.mulf %196, %197 : vector<4x256xf32>
    %199 = arith.addf %193, %198 : vector<4x256xf32>
    %200 = vector.extract_strided_slice %180 {offsets = [0, 3], sizes = [4, 1], strides = [1, 1]} : vector<4x4xf32> to vector<4x1xf32>
    %201 = vector.extract_strided_slice %181 {offsets = [3, 0], sizes = [1, 256], strides = [1, 1]} : vector<4x256xf32> to vector<1x256xf32>
    %202 = vector.broadcast %200 : vector<4x1xf32> to vector<4x256xf32>
    %203 = vector.broadcast %201 : vector<1x256xf32> to vector<4x256xf32>
    %204 = arith.mulf %202, %203 : vector<4x256xf32>
    %205 = arith.addf %199, %204 : vector<4x256xf32>
    %206 = vector.extract_strided_slice %1 {offsets = [0, 15], sizes = [4, 241], strides = [1, 1]} : vector<4x256xbf16> to vector<4x241xbf16>
    %207 = vector.extract_strided_slice %1 {offsets = [0, 0], sizes = [4, 15], strides = [1, 1]} : vector<4x256xbf16> to vector<4x15xbf16>
    %208 = tpu.concatenate %206, %207 in 1 : vector<4x241xbf16>, vector<4x15xbf16> -> vector<4x256xbf16>
    %c6 = arith.constant 6 : index
    %c0_30 = arith.constant 0 : index
    %c0_31 = arith.constant 0 : index
    %209 = vector.load %arg4[%c6, %c0_30, %c0_31] : memref<9x1x256xbf16, #tpu.memory_space<vmem>>, vector<1x1x256xbf16>
    %210 = vector.shape_cast %209 : vector<1x1x256xbf16> to vector<1x256xbf16>
    %211 = vector.broadcast %210 : vector<1x256xbf16> to vector<4x256xbf16>
    %212 = arith.mulf %208, %211 : vector<4x256xbf16>
    %c6_32 = arith.constant 6 : index
    %c0_33 = arith.constant 0 : index
    %c0_34 = arith.constant 0 : index
    %213 = vector.load %arg2[%c6_32, %c0_33, %c0_34] : memref<9x4x4xbf16, #tpu.memory_space<vmem>>, vector<1x4x4xbf16>
    %214 = vector.shape_cast %213 : vector<1x4x4xbf16> to vector<4x4xbf16>
    %215 = arith.extf %214 : vector<4x4xbf16> to vector<4x4xf32>
    %216 = arith.extf %212 : vector<4x256xbf16> to vector<4x256xf32>
    %217 = vector.extract_strided_slice %215 {offsets = [0, 0], sizes = [4, 1], strides = [1, 1]} : vector<4x4xf32> to vector<4x1xf32>
    %218 = vector.extract_strided_slice %216 {offsets = [0, 0], sizes = [1, 256], strides = [1, 1]} : vector<4x256xf32> to vector<1x256xf32>
    %219 = vector.broadcast %217 : vector<4x1xf32> to vector<4x256xf32>
    %220 = vector.broadcast %218 : vector<1x256xf32> to vector<4x256xf32>
    %221 = arith.mulf %219, %220 : vector<4x256xf32>
    %222 = arith.addf %205, %221 : vector<4x256xf32>
    %223 = vector.extract_strided_slice %215 {offsets = [0, 1], sizes = [4, 1], strides = [1, 1]} : vector<4x4xf32> to vector<4x1xf32>
    %224 = vector.extract_strided_slice %216 {offsets = [1, 0], sizes = [1, 256], strides = [1, 1]} : vector<4x256xf32> to vector<1x256xf32>
    %225 = vector.broadcast %223 : vector<4x1xf32> to vector<4x256xf32>
    %226 = vector.broadcast %224 : vector<1x256xf32> to vector<4x256xf32>
    %227 = arith.mulf %225, %226 : vector<4x256xf32>
    %228 = arith.addf %222, %227 : vector<4x256xf32>
    %229 = vector.extract_strided_slice %215 {offsets = [0, 2], sizes = [4, 1], strides = [1, 1]} : vector<4x4xf32> to vector<4x1xf32>
    %230 = vector.extract_strided_slice %216 {offsets = [2, 0], sizes = [1, 256], strides = [1, 1]} : vector<4x256xf32> to vector<1x256xf32>
    %231 = vector.broadcast %229 : vector<4x1xf32> to vector<4x256xf32>
    %232 = vector.broadcast %230 : vector<1x256xf32> to vector<4x256xf32>
    %233 = arith.mulf %231, %232 : vector<4x256xf32>
    %234 = arith.addf %228, %233 : vector<4x256xf32>
    %235 = vector.extract_strided_slice %215 {offsets = [0, 3], sizes = [4, 1], strides = [1, 1]} : vector<4x4xf32> to vector<4x1xf32>
    %236 = vector.extract_strided_slice %216 {offsets = [3, 0], sizes = [1, 256], strides = [1, 1]} : vector<4x256xf32> to vector<1x256xf32>
    %237 = vector.broadcast %235 : vector<4x1xf32> to vector<4x256xf32>
    %238 = vector.broadcast %236 : vector<1x256xf32> to vector<4x256xf32>
    %239 = arith.mulf %237, %238 : vector<4x256xf32>
    %240 = arith.addf %234, %239 : vector<4x256xf32>
    %241 = vector.extract_strided_slice %1 {offsets = [0, 16], sizes = [4, 240], strides = [1, 1]} : vector<4x256xbf16> to vector<4x240xbf16>
    %242 = vector.extract_strided_slice %1 {offsets = [0, 0], sizes = [4, 16], strides = [1, 1]} : vector<4x256xbf16> to vector<4x16xbf16>
    %243 = tpu.concatenate %241, %242 in 1 : vector<4x240xbf16>, vector<4x16xbf16> -> vector<4x256xbf16>
    %c7 = arith.constant 7 : index
    %c0_35 = arith.constant 0 : index
    %c0_36 = arith.constant 0 : index
    %244 = vector.load %arg4[%c7, %c0_35, %c0_36] : memref<9x1x256xbf16, #tpu.memory_space<vmem>>, vector<1x1x256xbf16>
    %245 = vector.shape_cast %244 : vector<1x1x256xbf16> to vector<1x256xbf16>
    %246 = vector.broadcast %245 : vector<1x256xbf16> to vector<4x256xbf16>
    %247 = arith.mulf %243, %246 : vector<4x256xbf16>
    %c7_37 = arith.constant 7 : index
    %c0_38 = arith.constant 0 : index
    %c0_39 = arith.constant 0 : index
    %248 = vector.load %arg2[%c7_37, %c0_38, %c0_39] : memref<9x4x4xbf16, #tpu.memory_space<vmem>>, vector<1x4x4xbf16>
    %249 = vector.shape_cast %248 : vector<1x4x4xbf16> to vector<4x4xbf16>
    %250 = arith.extf %249 : vector<4x4xbf16> to vector<4x4xf32>
    %251 = arith.extf %247 : vector<4x256xbf16> to vector<4x256xf32>
    %252 = vector.extract_strided_slice %250 {offsets = [0, 0], sizes = [4, 1], strides = [1, 1]} : vector<4x4xf32> to vector<4x1xf32>
    %253 = vector.extract_strided_slice %251 {offsets = [0, 0], sizes = [1, 256], strides = [1, 1]} : vector<4x256xf32> to vector<1x256xf32>
    %254 = vector.broadcast %252 : vector<4x1xf32> to vector<4x256xf32>
    %255 = vector.broadcast %253 : vector<1x256xf32> to vector<4x256xf32>
    %256 = arith.mulf %254, %255 : vector<4x256xf32>
    %257 = arith.addf %240, %256 : vector<4x256xf32>
    %258 = vector.extract_strided_slice %250 {offsets = [0, 1], sizes = [4, 1], strides = [1, 1]} : vector<4x4xf32> to vector<4x1xf32>
    %259 = vector.extract_strided_slice %251 {offsets = [1, 0], sizes = [1, 256], strides = [1, 1]} : vector<4x256xf32> to vector<1x256xf32>
    %260 = vector.broadcast %258 : vector<4x1xf32> to vector<4x256xf32>
    %261 = vector.broadcast %259 : vector<1x256xf32> to vector<4x256xf32>
    %262 = arith.mulf %260, %261 : vector<4x256xf32>
    %263 = arith.addf %257, %262 : vector<4x256xf32>
    %264 = vector.extract_strided_slice %250 {offsets = [0, 2], sizes = [4, 1], strides = [1, 1]} : vector<4x4xf32> to vector<4x1xf32>
    %265 = vector.extract_strided_slice %251 {offsets = [2, 0], sizes = [1, 256], strides = [1, 1]} : vector<4x256xf32> to vector<1x256xf32>
    %266 = vector.broadcast %264 : vector<4x1xf32> to vector<4x256xf32>
    %267 = vector.broadcast %265 : vector<1x256xf32> to vector<4x256xf32>
    %268 = arith.mulf %266, %267 : vector<4x256xf32>
    %269 = arith.addf %263, %268 : vector<4x256xf32>
    %270 = vector.extract_strided_slice %250 {offsets = [0, 3], sizes = [4, 1], strides = [1, 1]} : vector<4x4xf32> to vector<4x1xf32>
    %271 = vector.extract_strided_slice %251 {offsets = [3, 0], sizes = [1, 256], strides = [1, 1]} : vector<4x256xf32> to vector<1x256xf32>
    %272 = vector.broadcast %270 : vector<4x1xf32> to vector<4x256xf32>
    %273 = vector.broadcast %271 : vector<1x256xf32> to vector<4x256xf32>
    %274 = arith.mulf %272, %273 : vector<4x256xf32>
    %275 = arith.addf %269, %274 : vector<4x256xf32>
    %276 = vector.extract_strided_slice %1 {offsets = [0, 17], sizes = [4, 239], strides = [1, 1]} : vector<4x256xbf16> to vector<4x239xbf16>
    %277 = vector.extract_strided_slice %1 {offsets = [0, 0], sizes = [4, 17], strides = [1, 1]} : vector<4x256xbf16> to vector<4x17xbf16>
    %278 = tpu.concatenate %276, %277 in 1 : vector<4x239xbf16>, vector<4x17xbf16> -> vector<4x256xbf16>
    %c8 = arith.constant 8 : index
    %c0_40 = arith.constant 0 : index
    %c0_41 = arith.constant 0 : index
    %279 = vector.load %arg4[%c8, %c0_40, %c0_41] : memref<9x1x256xbf16, #tpu.memory_space<vmem>>, vector<1x1x256xbf16>
    %280 = vector.shape_cast %279 : vector<1x1x256xbf16> to vector<1x256xbf16>
    %281 = vector.broadcast %280 : vector<1x256xbf16> to vector<4x256xbf16>
    %282 = arith.mulf %278, %281 : vector<4x256xbf16>
    %c8_42 = arith.constant 8 : index
    %c0_43 = arith.constant 0 : index
    %c0_44 = arith.constant 0 : index
    %283 = vector.load %arg2[%c8_42, %c0_43, %c0_44] : memref<9x4x4xbf16, #tpu.memory_space<vmem>>, vector<1x4x4xbf16>
    %284 = vector.shape_cast %283 : vector<1x4x4xbf16> to vector<4x4xbf16>
    %285 = arith.extf %284 : vector<4x4xbf16> to vector<4x4xf32>
    %286 = arith.extf %282 : vector<4x256xbf16> to vector<4x256xf32>
    %287 = vector.extract_strided_slice %285 {offsets = [0, 0], sizes = [4, 1], strides = [1, 1]} : vector<4x4xf32> to vector<4x1xf32>
    %288 = vector.extract_strided_slice %286 {offsets = [0, 0], sizes = [1, 256], strides = [1, 1]} : vector<4x256xf32> to vector<1x256xf32>
    %289 = vector.broadcast %287 : vector<4x1xf32> to vector<4x256xf32>
    %290 = vector.broadcast %288 : vector<1x256xf32> to vector<4x256xf32>
    %291 = arith.mulf %289, %290 : vector<4x256xf32>
    %292 = arith.addf %275, %291 : vector<4x256xf32>
    %293 = vector.extract_strided_slice %285 {offsets = [0, 1], sizes = [4, 1], strides = [1, 1]} : vector<4x4xf32> to vector<4x1xf32>
    %294 = vector.extract_strided_slice %286 {offsets = [1, 0], sizes = [1, 256], strides = [1, 1]} : vector<4x256xf32> to vector<1x256xf32>
    %295 = vector.broadcast %293 : vector<4x1xf32> to vector<4x256xf32>
    %296 = vector.broadcast %294 : vector<1x256xf32> to vector<4x256xf32>
    %297 = arith.mulf %295, %296 : vector<4x256xf32>
    %298 = arith.addf %292, %297 : vector<4x256xf32>
    %299 = vector.extract_strided_slice %285 {offsets = [0, 2], sizes = [4, 1], strides = [1, 1]} : vector<4x4xf32> to vector<4x1xf32>
    %300 = vector.extract_strided_slice %286 {offsets = [2, 0], sizes = [1, 256], strides = [1, 1]} : vector<4x256xf32> to vector<1x256xf32>
    %301 = vector.broadcast %299 : vector<4x1xf32> to vector<4x256xf32>
    %302 = vector.broadcast %300 : vector<1x256xf32> to vector<4x256xf32>
    %303 = arith.mulf %301, %302 : vector<4x256xf32>
    %304 = arith.addf %298, %303 : vector<4x256xf32>
    %305 = vector.extract_strided_slice %285 {offsets = [0, 3], sizes = [4, 1], strides = [1, 1]} : vector<4x4xf32> to vector<4x1xf32>
    %306 = vector.extract_strided_slice %286 {offsets = [3, 0], sizes = [1, 256], strides = [1, 1]} : vector<4x256xf32> to vector<1x256xf32>
    %307 = vector.broadcast %305 : vector<4x1xf32> to vector<4x256xf32>
    %308 = vector.broadcast %306 : vector<1x256xf32> to vector<4x256xf32>
    %309 = arith.mulf %307, %308 : vector<4x256xf32>
    %310 = arith.addf %304, %309 : vector<4x256xf32>
    %c0_45 = arith.constant 0 : index
    %c0_46 = arith.constant 0 : index
    %311 = vector.load %arg3[%c0_45, %c0_46] : memref<4x1xf32, #tpu.memory_space<vmem>>, vector<4x1xf32>
    %312 = vector.broadcast %311 : vector<4x1xf32> to vector<4x256xf32>
    %313 = arith.addf %310, %312 : vector<4x256xf32>
    %cst_47 = arith.constant 0.000000e+00 : f32
    %314 = vector.broadcast %cst_47 : f32 to vector<4x256xf32>
    %315 = arith.maximumf %313, %314 : vector<4x256xf32>
    %316 = arith.extf %1 : vector<4x256xbf16> to vector<4x256xf32>
    %317 = arith.addf %316, %315 : vector<4x256xf32>
    %318 = arith.truncf %317 : vector<4x256xf32> to vector<4x256xbf16>
    %c0_48 = arith.constant 0 : index
    %c0_49 = arith.constant 0 : index
    %c0_50 = arith.constant 0 : index
    %319 = vector.load %arg5[%c0_48, %c0_49, %c0_50] : memref<1x4x256xbf16, #tpu.memory_space<vmem>>, vector<1x4x256xbf16>
    %320 = vector.shape_cast %319 : vector<1x4x256xbf16> to vector<4x256xbf16>
    %321 = vector.shape_cast %318 : vector<4x256xbf16> to vector<1x4x256xbf16>
    tpu.vector_store %arg5[%c0_48, %c0_49, %c0_50], %321 {strides = array<i32>} : memref<1x4x256xbf16, #tpu.memory_space<vmem>>, vector<1x4x256xbf16>,
    return
  }
  func.func @transform_0(%arg0: i32) -> (i32, i32, i32) {
    %c0_i32 = arith.constant 0 : i32
    %c0_i32_0 = arith.constant 0 : i32
    %c0_i32_1 = arith.constant 0 : i32
    return %arg0, %c0_i32, %c0_i32_0 : i32, i32, i32
  }
  func.func @transform_1(%arg0: i32) -> (i32, i32, i32) {
    %c0_i32 = arith.constant 0 : i32
    %c0_i32_0 = arith.constant 0 : i32
    %c0_i32_1 = arith.constant 0 : i32
    %c0_i32_2 = arith.constant 0 : i32
    return %c0_i32, %c0_i32_0, %c0_i32_1 : i32, i32, i32
  }
  func.func @transform_2(%arg0: i32) -> (i32, i32) {
    %c0_i32 = arith.constant 0 : i32
    %c0_i32_0 = arith.constant 0 : i32
    %c0_i32_1 = arith.constant 0 : i32
    return %c0_i32, %c0_i32_0 : i32, i32
  }
  func.func @transform_3(%arg0: i32) -> (i32, i32, i32) {
    %c0_i32 = arith.constant 0 : i32
    %c0_i32_0 = arith.constant 0 : i32
    %c0_i32_1 = arith.constant 0 : i32
    %c0_i32_2 = arith.constant 0 : i32
    return %c0_i32, %c0_i32_0, %c0_i32_1 : i32, i32, i32
  }
  func.func @transform_4(%arg0: i32) -> (i32, i32, i32) {
    %c0_i32 = arith.constant 0 : i32
    %c0_i32_0 = arith.constant 0 : i32
    %c0_i32_1 = arith.constant 0 : i32
    return %arg0, %c0_i32, %c0_i32_0 : i32, i32, i32
  }
}

</mosaic_0001>

<bundles_post_ra>
// kernel: tpu_custom_call.1
= control target key start
LH: loop header
LB: loop body
LE: loop exit
PB: predicated region body
PF: predicated region fallthrough
CT: control target
= control target key end

     0   :  { %9 = vsyncpa [#allocation3], 0  ;;  %s2531_s0 = inlined_call_operand.vmem [shape: bf16[2,4,256], index: 0, kind: input, shape index: {}]   ;;  %s2532_s1 = inlined_call_operand.vmem [shape: bf16[9,4,4], index: 1, kind: input, shape index: {}]   ;;  %s2533_s2 = inlined_call_operand.vmem [shape: f32[4,1], index: 2, kind: input, shape index: {}]   ;;  %s2534_s3 = inlined_call_operand.vmem [shape: bf16[9,1,256], index: 3, kind: input, shape index: {}]   ;;  %s2535_s4 = inlined_call_operand.hbm [shape: bf16[2,4,256], index: 4, kind: output, shape index: {}]  }
   0x1   :  { %11 = vsyncpa [#allocation3 + $0x1], 0  ;;  %s2027_s15 = smov 0   ;;  %s2029_s16 = smov 0  }
   0x2   :  { %s2031_s17 = smov 0   ;;  %s2033_s18 = smov 0  }
   0x3 LB: > { %s2048_s19 = sadd.s32 4294967295, %s1984_s18   ;;  %s1729_s20 = sadd.s32 4294967294, %s1984_s18   ;;  %s1984_s18 = sphi %s2033_s18, %s2541_s18   ;;  %s1980_s17 = sphi %s2031_s17, %s2540_s17   ;;  %s1976_s16 = sphi %s2029_s16, %s2539_s16   ;;  %s1972_s15 = sphi %s2027_s15, %s2538_s15  }
   0x4   : > { %s2052_s21 = sadd.s32 1, %s1984_s18   ;;  %s113_s22 = sadd.s32 1, %s1980_s17 }
   0x5   : > { %s110_s23 = ssub.s32 %s1984_s18, %s2052_s21  ;;  %p123_p0 = scmp.ne.s32.totalorder %s1980_s17, %s1976_s16 }
   0x6   : > { %p111_p1 = scmp.eq.s32.totalorder %s110_s23, 0  ;;  %p124_p2 = scmp.eq.s32.totalorder %s2048_s19, 1 }
   0x7   : > { %p129_p3 = scmp.ne.s32.totalorder %s1976_s16, %s1972_s15  ;;  %p130_p4 = scmp.eq.s32.totalorder %s1729_s20, 1 }
   0x8   : > { %s2063_s24 = scalar_select %p111_p1, %s1980_s17, %s113_s22  }
   0x9   : > { %p2065_p5 = por %p124_p2, %p123_p0  ;;  %p2069_p6 = por %p130_p4, %p129_p3 }
   0xa   : > { %p1732_p7 = scmp.ge.s32.totalorder %s1984_s18, 1  ;;  %p165_p8 = scmp.lt.s32.totalorder %s1984_s18, 3 }
   0xc   : > { %p166_p9 = pnand %p1732_p7, %p165_p8 }
   0xd   : > { %p191_p10 = scmp.lt.s32.totalorder (!%p166_p9), %s2048_s19, 1  ;;  %s1990_s10 = smov (!%p166_p9), 17  }
   0xe   : > { %169 = sbr.rel (%p166_p9) target bundleno = 272 (0x110), region = 36  ;;  %s1992_s20 = smov (!%p166_p9), 16  }
   0xf   : > { %s1993_s22 = smov (!%p166_p9), 15   ;;  %s1994_s30 = smov (!%p166_p9), 1  }
  0x10   : > { %s1997_s13 = smov (!%p166_p9), 111   ;;  %s1998_s14 = smov (!%p166_p9), 112  }
  0x11   : > { %s1767_s27 = sshll.u32 (!%p166_p9), %s2048_s19, 6 }
  0x13   : > { %v258_v0 = vld [vmem:[%s2532_s1] sm:$0x3]  ;;  %v1739_v1 = vld [vmem:[%s2532_s1 + $0x2] sm:$0x3]  ;;  %v201_v2 = vlaneseq  ;;  %v1986_v3 = vmov 0   ;;  %s192_s5 = scalar_select %p191_p10, %s2048_s19, 1 }
  0x14   : > { %1822 = vset.pattern.permute.xlu1 %v1986_v3  ;;  %v259_v4 = vunpack.c.l.bf16 %v258_v0  ;;  %v418_v5 = vunpack.c.l.bf16 %v1739_v1  ;;  %v1987_v6 = vmov 1983009808   ;;  %v1988_v10 = vmov 2   ;;  %v1742_v18 = vld [vmem:[%s2532_s1 + $0x4] sm:$0x3] }
  0x15   : > { %v199_v7 = vunpack.c.l.s4 %v1987_v6  ;;  %v2083_v8 = vshrl.u32 %v201_v2, 7  ;;  %1834 = vset.pattern.permute.xlu0 %v1988_v10  ;;  %s1766_s6 = sshll.u32 %s192_s5, 2  ;;  %v1989_v15 = vmov 1   ;;  %v1991_v17 = vmov 3   ;;  %v1745_v19 = vld [vmem:[%s2532_s1 + $0x6] sm:$0x3] }
  0x16   : > { %v1823_v9 = vpack.i.bf16 %v418_v5, %v259_v4  ;;  %s195_s9 = scalar_lea.vmem %s2531_s0, %s1766_s6  ;;  %v577_v20 = vunpack.c.l.bf16 %v1742_v18  ;;  %v736_v21 = vunpack.c.l.bf16 %v1745_v19  ;;  %v1746_v23 = vld [vmem:[%s2532_s1 + $0x8] sm:$0x3]  ;;  %v1749_v24 = vld [vmem:[%s2532_s1 + $0xa] sm:$0x3]  ;;  %v1752_v28 = vld [vmem:[%s2532_s1 + $0xc] sm:$0x3]  ;;  %s1668_s6 = scalar_lea.hbm %s2535_s4, %s1767_s27 }
  0x17   : > { %v200_v11 = vunpack.c.0.s8 %v199_v7  ;;  %v196_v13 = vld [vmem:[%s195_s9] sm:$0xf]  ;;  %v842_v25 = vunpack.c.l.bf16 %v1746_v23  ;;  %v1041_v26 = vunpack.c.l.bf16 %v1749_v24  ;;  %v1755_v29 = vld [vmem:[%s2532_s1 + $0xe] sm:$0x3]  ;;  %v1200_v31 = vunpack.c.l.bf16 %v1752_v28  ;;  %s1995_s9 = smov 113  }
  0x18   : > { %1824 = vperm.xlu1 %1822, %v1823_v9   ;;  %v1847_v22 = vpack.i.bf16 %v736_v21, %v577_v20  ;;  %v2132_v30 = vunpack.c.l.bf16 %v196_v13  ;;  %v1359_v32 = vunpack.c.l.bf16 %v1755_v29  ;;  %v2135_v33 = vsub.s32 1, %v2083_v8  ;;  %v1758_v55 = vld [vmem:[%s2532_s1 + $0x10] sm:$0x3]  ;;  %v1622_v0 = vld [vmem:[%s2533_s2] sm:$0xf] }
  0x19   : > { %v203_v12 = vsub.s32 %v200_v11, %v2083_v8  ;;  %v1871_v27 = vpack.i.bf16 %v1041_v26, %v842_v25  ;;  %v2138_v34 = vsub.s32 2, %v2083_v8  ;;  %v898_v35 = vsub.s32 5, %v2083_v8  ;;  %v1736_v5 = vld.sshfl [vmem:[%s2534_s3] sm:$0x11 pattern:$0x75316420] }
  0x1a   : > { %v1895_v36 = vpack.i.bf16 %v1359_v32, %v1200_v31  ;;  %v895_v37 = vrot.slane %v2132_v30, %v2135_v33  ;;  %v933_v39 = vsub.s32 6, %v2083_v8  ;;  %v2150_v40 = vsub.s32 0, %v2083_v8 }
  0x1b   : > { %v2091_v14 = vrot.slane %v196_v13, %v203_v12  ;;  %v930_v38 = vrot.slane %v2132_v30, %v2138_v34  ;;  %v899_v41 = vrot.slane %v2132_v30, %v898_v35  ;;  %v863_v47 = vsub.s32 4, %v2083_v8 }
  0x1c   : > { %1828 = vset.pattern.permute.xlu1 %v1989_v15  ;;  %v905_v42 = vrot.slane %v895_v37, %v2135_v33  ;;  %v934_v43 = vrot.slane %v2132_v30, %v933_v39  ;;  %v860_v46 = vrot.slane %v2132_v30, %v2150_v40  ;;  %v2178_v56 = vsub.s32 3, %v2083_v8 }
  0x1d   : > { %208 = vrot.lane.b32.xlu0 %v2091_v14, %s1990_s10  ;;  %1830 = vperm.xlu1 %1828, %v1823_v9   ;;  %v2097_v16 = vcombine.high %v2091_v14, %v2091_v14  ;;  %v940_v44 = vrot.slane %v930_v38, %v2138_v34  ;;  %v909_v45 = vrot.slane %v899_v41, %v2135_v33  ;;  %v968_v58 = vsub.s32 7, %v2083_v8 }
  0x1e   : > { %v944_v48 = vrot.slane %v934_v43, %v2138_v34  ;;  %v864_v50 = vrot.slane %v2132_v30, %v863_v47  ;;  %v870_v51 = vrot.slane %v860_v46, %v2150_v40  ;;  %v965_v57 = vrot.slane %v2132_v30, %v2178_v56 }
  0x1f   : > { %v2162_v49 = vcombine.low %v905_v42, %v909_v45  ;;  %v1518_v59 = vunpack.c.l.bf16 %v1758_v55  ;;  %v969_v60 = vrot.slane %v2132_v30, %v968_v58  ;;  %v1999_v1 = vmov 1966171168   ;;  %v1744_v58 = vld.sshfl [vmem:[%s2534_s3 + $0x6] sm:$0x11 pattern:$0x75316420] }
  0x20   : > { %v2166_v52 = vcombine.low %v940_v44, %v944_v48  ;;  %v874_v53 = vrot.slane %v864_v50, %v2150_v40  ;;  %v975_v61 = vrot.slane %v965_v57, %v2178_v56  ;;  %v229_v2 = vunpack.c.l.s4 %v1999_v1 }
  0x21   : > { %206 = vrot.lane.b32.xlu0 %v2097_v16, %s1990_s10  ;;  %1840 = vset.pattern.permute.xlu1 %v1991_v17  ;;  %s1996_s10 = smov 127   ;;  %v979_v62 = vrot.slane %v969_v60, %v2178_v56  ;;  %v227_v6 = vcombine.high %v1736_v5, %v1736_v5  ;;  %vm210_vm0 = vcmask 138240   ;;  %vm367_vm1 = vcmask 130048  }
  0x22   : > { %1842 = vperm.xlu1 %1840, %v1823_v9   ;;  %v2172_v54 = vcombine.low %v870_v51, %v874_v53  ;;  %v230_v4 = vunpack.c.0.s8 %v229_v2  ;;  %vm526_vm2 = vcmask 121856   ;;  %vm685_vm3 = vcmask 7168  }
  0x23   : > { %v2191_v63 = vcombine.low %v975_v61, %v979_v62  ;;  %vm990_vm4 = vcmask 1039360   ;;  %vm1149_vm5 = vcmask 924672   ;;  %vm1308_vm6 = vcmask 916480  }
  0x24   : > { %v2209_v7 = vsub.s32 %v230_v4, %v2083_v8  ;;  %vm1467_vm7 = vcmask 908288  }
  0x25   : > { %1836 = vperm.xlu0 %1834, %v1823_v9  }
  0x26   : > { %363 = vrot.lane.b32.xlu1 %v2097_v16, %s1992_s20  ;;  %v234_v9 = vrot.slane %v1736_v5, %v2209_v7 }
  0x27   : > { %1846 = vset.pattern.permute.xlu1 %v1986_v3 }
  0x28   : > { %v243_v11 = vpack.i.b16 %v234_v9, %v234_v9 }
  0x29   : > { %365 = vrot.lane.b32.xlu0 %v2091_v14, %s1992_s20 }
  0x2a   : > { %522 = vrot.lane.b32.xlu1 %v2097_v16, %s1993_s22  ;;  %1852 = vset.pattern.permute.xlu0 %v1989_v15 }
  0x2d   : > { %524 = vrot.lane.b32.xlu0 %v2091_v14, %s1993_s22  ;;  %s188_s22 = sand.u32 1, %s1976_s16  }
  0x2e   : > { %1848 = vperm.xlu1 %1846, %v1847_v22   ;;  %s1733_s23 = sshll.u32 %s188_s22, 2  ;;  %s1656_s7 = scalar_lea.sflag [#allocation3], %s188_s22 }
  0x2f   : > { %s190_s28 = scalar_lea.vmem [#allocation2], %s1733_s23 }
  0x30   : > { %s1670_s29 = sshll.u32 %s190_s28, 4  ;;  %s1671_s29 = int_to_ptr.vmem [resolvable:$true] %s1670_s29 }
  0x31   : > { %1854 = vperm.xlu0 %1852, %v1847_v22   ;;  %s1924_s8 = scalar_lea.vmem %s1671_s29, 64 }
  0x32   : > { %1858 = vset.pattern.permute.xlu1 %v1988_v10  ;;  %p1925_p11 = scmp.ne.s32.totalorder %s1671_s29, %s1924_s8 }
  0x33   : > { %1860 = vperm.xlu1 %1858, %v1847_v22  }
  0x34   : > { %p1926_p12 = pnand %p1925_p11, %p2065_p5 }
  0x35   : > { %681 = vrot.lane.b32.xlu0 %v2097_v16, %s1994_s30 }
  0x36   : > { %1870 = vset.pattern.permute.xlu0 %v1986_v3  ;;  %p1927_p13 = pneg %p1926_p12 }
  0x37   : > { %1864 = vset.pattern.permute.xlu1 %v1991_v17 }
  0x38   : > { %1866 = vperm.xlu1 %1864, %v1847_v22   ;;  %v2000_v22 = vmov 839922192  }
  0x39   : > { %1872 = vperm.xlu0 %1870, %v1871_v27   ;;  %v268_v23 = vunpack.c.l.s4 %v2000_v22 }
  0x3b   : > { %v269_v31 = vunpack.c.0.s8 %v268_v23 }
  0x3c   : > { %683 = vrot.lane.b32.xlu1 %v2091_v14, %s1994_s30 }
  0x3d   : > { %1876 = vset.pattern.permute.xlu1 %v1989_v15  ;;  %1888 = vset.pattern.permute.xlu0 %v1991_v17  ;;  %v2235_v45 = vsub.s32 %v269_v31, %v2083_v8 }
  0x3e   : > { %1890 = vperm.xlu0 %1888, %v1871_v27  }
  0x40   : > { %1878 = vperm.xlu1 %1876, %v1871_v27  }
  0x42   : > { %1145 = vrot.lane.b32.xlu0 %v2091_v14, %s1995_s9 }
  0x43   : > { %1894 = vset.pattern.permute.xlu0 %v1986_v3 }
  0x44   : > { %1882 = vset.pattern.permute.xlu1 %v1988_v10 }
  0x45   : > { %1884 = vperm.xlu1 %1882, %v1871_v27   ;;  %v1741_v27 = vld.sshfl [vmem:[%s2534_s3 + $0x4] sm:$0x11 pattern:$0x75316420] }
  0x46   : > { %1896 = vperm.xlu0 %1894, %v1895_v36   ;;  %v544_v37 = vcombine.high %v1741_v27, %v1741_v27  ;;  %v551_v43 = vrot.slane %v1741_v27, %v2209_v7 }
  0x48   : > { %v558_v50 = vrot.slane %v544_v37, %v2209_v7  ;;  %v560_v62 = vpack.i.b16 %v551_v43, %v551_v43 }
  0x49   : > { %986 = vrot.lane.b32.xlu1 %v2091_v14, %s1996_s10 }
  0x4a   : > { %1900 = vset.pattern.permute.xlu1 %v1989_v15  ;;  %1912 = vset.pattern.permute.xlu0 %v1991_v17  ;;  %v567_v9 = vpack.i.b16 %v558_v50, %v558_v50 }
  0x4b   : > { %1914 = vperm.xlu0 %1912, %v1895_v36  }
  0x4d   : > { %988 = vrot.lane.b32.xlu1 %v2097_v16, %s1996_s10 }
  0x4f   : > { %1463 = vrot.lane.b32.xlu0 %v2091_v14, %s1997_s13 }
  0x50   : > { %1918 = vset.pattern.permute.xlu0 %v1986_v3 }
  0x51   : > { %1147 = vrot.lane.b32.xlu1 %v2097_v16, %s1995_s9  ;;  %s2001_s9 = smov [#allocation2]  }
  0x52   : > { %s1928_s10 = sshll.u32 %s2001_s9, 4  ;;  %s1929_s10 = int_to_ptr.vmem [resolvable:$false] %s1928_s10 }
  0x53   : > { %1523 = vperm.xlu0 %1918, %v1518_v59   ;;  %s1930_s19 = scalar_lea.vmem %s1929_s10, 128  ;;  %p1931_p0 = scmp.lt.s32.totalorder %s1671_s29, %s1929_s10 }
  0x54   : > { %p1932_p1 = scmp.lt.s32.totalorder %s1930_s19, %s1924_s8 }
  0x55   : > { %1902 = vperm.xlu1 %1900, %v1895_v36  }
  0x56   : > { %p1933_p2 = por %p1932_p1, %p1931_p0 }
  0x57   : > { %1921 = vset.pattern.permute.xlu0 %v1991_v17 }
  0x58   : > { %1598 = vperm.xlu0 %1921, %v1518_v59   ;;  %p1934_p3 = pnand %p1933_p2, %p1927_p13 }
  0x59   : > { %1906 = vset.pattern.permute.xlu1 %v1988_v10 }
  0x5a   : > { %1908 = vperm.xlu1 %1906, %v1895_v36  }
  0x5c   : > { %1923 = vset.pattern.permute.xlu0 %v1986_v3 }
  0x5e   : > { %1304 = vrot.lane.b32.xlu1 %v2091_v14, %s1998_s14 }
  0x5f   : > { %1919 = vset.pattern.permute.xlu1 %v1989_v15  ;;  %v1738_v15 = vld.sshfl [vmem:[%s2534_s3 + $0x2] sm:$0x11 pattern:$0x75316420] }
  0x60   : > { %v385_v24 = vcombine.high %v1738_v15, %v1738_v15  ;;  %v392_v29 = vrot.slane %v1738_v15, %v2209_v7 }
  0x62   : > { %1306 = vrot.lane.b32.xlu1 %v2097_v16, %s1998_s14  ;;  %v399_v32 = vrot.slane %v385_v24, %v2209_v7  ;;  %v401_v42 = vpack.i.b16 %v392_v29, %v392_v29 }
  0x64   : > { %v408_v47 = vpack.i.b16 %v399_v32, %v399_v32  ;;  %v406_v61 = vrot.slane %v401_v42, %v2150_v40 }
  0x66   : > { %1465 = vrot.lane.b32.xlu1 %v2097_v16, %s1997_s13  ;;  %v413_v5 = vrot.slane %v408_v47, %v2150_v40 }
  0x6a   : > { %1548 = vperm.xlu1 %1919, %v1518_v59  }
  0x6e   : > { %1920 = vset.pattern.permute.xlu1 %v1988_v10  ;;  %v241_v10 = vrot.slane %v227_v6, %v2209_v7 }
  0x6f   : > { %1573 = vperm.xlu1 %1920, %v1518_v59  }
  0x70   : > { %v250_v12 = vpack.i.b16 %v241_v10, %v241_v10  ;;  %v703_v10 = vcombine.high %v1744_v58, %v1744_v58 }
  0x72   : > { %v255_v14 = vrot.slane %v250_v12, %v2150_v40  ;;  %v2266_v27 = vrot.slane %v703_v10, %v2209_v7 }
  0x73   : > { %1922 = vset.pattern.permute.xlu1 %v1986_v3  ;;  %v248_v3 = vrot.slane %v243_v11, %v2150_v40  ;;  %v2254_v11 = vrot.slane %v1744_v58, %v2209_v7 }
  0x74   : > { %1625 = vperm.xlu1 %1922, %v1622_v0  }
  0x75   : > { %v719_v32 = vpack.i.b16 %v2254_v11, %v2254_v11 }
  0x8f   : > { %v209_v13 = vpop.permute.xlu0 %208 }
  0x93   : > { %v207_v16 = vpop.permute.xlu0 %206  ;;  %v2218_v17 = vpop.permute.xlu1 %1824 }
  0x94   : > { %v211_v18 = vsel %vm210_vm0, %v209_v13, %v207_v16  ;;  %v216_v19 = vsel %vm210_vm0, %v207_v16, %v209_v13  ;;  %v1826_v44 = vunpack.i.l.bf16 %v2218_v17  ;;  %v1827_v6 = vunpack.i.h.bf16 %v2218_v17 }
  0x95   : > { %v256_v20 = vmul.bf16 %v248_v3, %v216_v19  ;;  %v257_v21 = vmul.bf16 %v255_v14, %v211_v18  ;;  %v565_v18 = vrot.slane %v560_v62, %v2150_v40  ;;  %v1748_v19 = vld.sshfl [vmem:[%s2534_s3 + $0xa] sm:$0x11 pattern:$0x75316420] }
  0x96   : > { %v273_v0 = vrot.slane %v1826_v44, %v2235_v45  ;;  %v432_v29 = vrot.slane %v1827_v6, %v2235_v45 }
  0x97   : > { %v260_v25 = vunpack.c.l.bf16 %v256_v20  ;;  %v261_v26 = vunpack.c.l.bf16 %v257_v21 }
  0x98   : > { %v2223_v28 = vpop.permute.xlu1 %1830 }
  0x99   : > { %v277_v35 = vrot.slane %v260_v25, %v2150_v40  ;;  %v281_v36 = vrot.slane %v261_v26, %v2150_v40  ;;  %v1832_v38 = vunpack.i.l.bf16 %v2223_v28  ;;  %v302_v39 = vrot.slane %v260_v25, %v2135_v33 }
  0x9a   : > { %v306_v41 = vrot.slane %v261_v26, %v2135_v33  ;;  %v327_v55 = vrot.slane %v260_v25, %v2138_v34  ;;  %v331_v57 = vrot.slane %v261_v26, %v2138_v34  ;;  %v352_v8 = vrot.slane %v260_v25, %v2178_v56 }
  0x9b   : > { %v284_v48 = vcombine.low %v277_v35, %v281_v36  ;;  %v298_v51 = vrot.slane %v1832_v38, %v2235_v45  ;;  %v356_v59 = vrot.slane %v261_v26, %v2178_v56  ;;  %v572_v26 = vrot.slane %v567_v9, %v2150_v40 }
  0x9c   : > { %v309_v53 = vcombine.low %v302_v39, %v306_v41  ;;  %v334_v3 = vcombine.low %v327_v55, %v331_v57  ;;  %v1008_v35 = vcombine.high %v1748_v19, %v1748_v19  ;;  %v1833_v36 = vunpack.i.h.bf16 %v2223_v28 }
  0x9d   : > { %v2237_v46 = vpop.permute.xlu1 %1842  ;;  %v286_v12 = vmul.f32 %v284_v48, %v273_v0  ;;  %v359_v15 = vcombine.low %v352_v8, %v356_v59 }
  0x9e   : > { %v1844_v1 = vunpack.i.l.bf16 %v2237_v46  ;;  %v311_v13 = vmul.f32 %v309_v53, %v298_v51  ;;  %v457_v0 = vrot.slane %v1833_v36, %v2235_v45 }
  0xa0   : > { %v1837_v60 = vpop.permute.xlu0 %1836  ;;  %v348_v17 = vrot.slane %v1844_v1, %v2235_v45  ;;  %v312_v31 = vadd.f32 %v311_v13, %v286_v12  ;;  %v1845_v1 = vunpack.i.h.bf16 %v2237_v46 }
  0xa1   : > { %v1838_v2 = vunpack.i.l.bf16 %v1837_v60  ;;  %v364_v4 = vpop.permute.xlu1 %363  ;;  %v1839_v37 = vunpack.i.h.bf16 %v1837_v60 }
  0xa2   : > { %v361_v42 = vmul.f32 %v359_v15, %v348_v17 }
  0xa3   : > { %v323_v14 = vrot.slane %v1838_v2, %v2235_v45  ;;  %v482_v2 = vrot.slane %v1839_v37, %v2235_v45 }
  0xa4   : > { %v366_v16 = vpop.permute.xlu0 %365 }
  0xa5   : > { %v336_v20 = vmul.f32 %v334_v3, %v323_v14  ;;  %v368_v21 = vsel %vm367_vm1, %v366_v16, %v364_v4  ;;  %v373_v22 = vsel %vm367_vm1, %v364_v4, %v366_v16  ;;  %v523_v23 = vpop.permute.xlu1 %522  ;;  %v1015_v16 = vrot.slane %v1748_v19, %v2209_v7 }
  0xa6   : > { %v414_v24 = vmul.bf16 %v406_v61, %v373_v22  ;;  %v415_v25 = vmul.bf16 %v413_v5, %v368_v21  ;;  %v507_v21 = vrot.slane %v1845_v1, %v2235_v45  ;;  %v726_v19 = vpack.i.b16 %v2266_v27, %v2266_v27  ;;  %v1751_v27 = vld.sshfl [vmem:[%s2534_s3 + $0xc] sm:$0x11 pattern:$0x75316420] }
  0xa7   : > { %v337_v43 = vadd.f32 %v336_v20, %v312_v31 }
  0xa8   : > { %v419_v38 = vunpack.c.l.bf16 %v414_v24  ;;  %v420_v39 = vunpack.c.l.bf16 %v415_v25  ;;  %v525_v41 = vpop.permute.xlu0 %524 }
  0xa9   : > { %v527_v44 = vsel %vm526_vm2, %v525_v41, %v523_v23  ;;  %v532_v47 = vsel %vm526_vm2, %v523_v23, %v525_v41  ;;  %v2274_v48 = vpop.permute.xlu1 %1848  ;;  %v362_v4 = vadd.f32 %v361_v42, %v337_v43 }
  0xaa   : > { %v436_v50 = vrot.slane %v419_v38, %v2150_v40  ;;  %v440_v51 = vrot.slane %v420_v39, %v2150_v40  ;;  %v461_v53 = vrot.slane %v419_v38, %v2135_v33  ;;  %v465_v28 = vrot.slane %v420_v39, %v2135_v33 }
  0xab   : > { %v486_v55 = vrot.slane %v419_v38, %v2138_v34  ;;  %v490_v57 = vrot.slane %v420_v39, %v2138_v34  ;;  %v511_v58 = vrot.slane %v419_v38, %v2178_v56  ;;  %v515_v8 = vrot.slane %v420_v39, %v2178_v56 }
  0xac   : > { %v443_v59 = vcombine.low %v436_v50, %v440_v51  ;;  %v468_v60 = vcombine.low %v461_v53, %v465_v28  ;;  %v573_v61 = vmul.bf16 %v565_v18, %v532_v47  ;;  %v574_v62 = vmul.bf16 %v572_v26, %v527_v44  ;;  %v2291_v12 = vpop.permute.xlu0 %1854 }
  0xad   : > { %v493_v6 = vcombine.low %v486_v55, %v490_v57  ;;  %v518_v14 = vcombine.low %v511_v58, %v515_v8  ;;  %v1850_v15 = vunpack.i.l.bf16 %v2274_v48  ;;  %v1856_v23 = vunpack.i.l.bf16 %v2291_v12 }
  0xae   : > { %v445_v5 = vmul.f32 %v443_v59, %v432_v29  ;;  %v2287_v9 = vunpack.c.l.bf16 %v573_v61  ;;  %v2289_v10 = vunpack.c.l.bf16 %v574_v62  ;;  %v2293_v13 = vpop.permute.xlu1 %1860  ;;  %v470_v3 = vmul.f32 %v468_v60, %v457_v0 }
  0xaf   : > { %v495_v25 = vmul.f32 %v493_v6, %v482_v2  ;;  %v1022_v29 = vrot.slane %v1008_v35, %v2209_v7  ;;  %v520_v31 = vmul.f32 %v518_v14, %v507_v21  ;;  %v1862_v36 = vunpack.i.l.bf16 %v2293_v13 }
  0xb0   : > { %v446_v46 = vadd.f32 %v445_v5, %v362_v4  ;;  %v595_v18 = vrot.slane %v2287_v9, %v2150_v40  ;;  %v599_v17 = vrot.slane %v2289_v10, %v2150_v40  ;;  %v620_v20 = vrot.slane %v2287_v9, %v2135_v33  ;;  %v682_v50 = vpop.permute.xlu0 %681  ;;  %v1754_v5 = vld.sshfl [vmem:[%s2534_s3 + $0xe] sm:$0x11 pattern:$0x75316420] }
  0xb1   : > { %v624_v22 = vrot.slane %v2289_v10, %v2135_v33  ;;  %v1024_v38 = vpack.i.b16 %v1015_v16, %v1015_v16  ;;  %v591_v41 = vrot.slane %v1850_v15, %v2235_v45  ;;  %v616_v43 = vrot.slane %v1856_v23, %v2235_v45 }
  0xb2   : > { %v471_v24 = vadd.f32 %v470_v3, %v446_v46  ;;  %v602_v26 = vcombine.low %v595_v18, %v599_v17  ;;  %v645_v44 = vrot.slane %v2287_v9, %v2138_v34  ;;  %v649_v35 = vrot.slane %v2289_v10, %v2138_v34 }
  0xb3   : > { %v2311_v37 = vpop.permute.xlu1 %1866  ;;  %v627_v42 = vcombine.low %v620_v20, %v624_v22  ;;  %v731_v47 = vrot.slane %v726_v19, %v2150_v40  ;;  %v724_v28 = vrot.slane %v719_v32, %v2150_v40  ;;  %v1031_v55 = vpack.i.b16 %v1022_v29, %v1022_v29 }
  0xb4   : > { %v496_v39 = vadd.f32 %v495_v25, %v471_v24  ;;  %v604_v53 = vmul.f32 %v602_v26, %v591_v41  ;;  %v641_v57 = vrot.slane %v1862_v36, %v2235_v45  ;;  %v1868_v58 = vunpack.i.l.bf16 %v2311_v37  ;;  %v2341_v14 = vpop.permute.xlu0 %1872 }
  0xb5   : > { %v2330_v59 = vrot.slane %v1024_v38, %v2150_v40  ;;  %v1167_v60 = vcombine.high %v1751_v27, %v1751_v27  ;;  %v629_v62 = vmul.f32 %v627_v42, %v616_v43  ;;  %v670_v0 = vrot.slane %v2287_v9, %v2178_v56 }
  0xb6   : > { %v521_v51 = vadd.f32 %v520_v31, %v496_v39  ;;  %v652_v2 = vcombine.low %v645_v44, %v649_v35  ;;  %v674_v11 = vrot.slane %v2289_v10, %v2178_v56  ;;  %v2344_v15 = vrot.slane %v1031_v55, %v2150_v40 }
  0xb7   : > { %v684_v8 = vpop.permute.xlu1 %683  ;;  %v1174_v9 = vrot.slane %v1751_v27, %v2209_v7  ;;  %v1851_v16 = vunpack.i.h.bf16 %v2274_v48  ;;  %v666_v10 = vrot.slane %v1868_v58, %v2235_v45  ;;  %v1857_v20 = vunpack.i.h.bf16 %v2291_v12 }
  0xb8   : > { %v605_v61 = vadd.f32 %v604_v53, %v521_v51  ;;  %v686_v1 = vsel %vm685_vm3, %v684_v8, %v682_v50  ;;  %v691_v32 = vsel %vm685_vm3, %v682_v50, %v684_v8  ;;  %v654_v46 = vmul.f32 %v652_v2, %v641_v57 }
  0xb9   : > { %v733_v4 = vmul.bf16 %v731_v47, %v686_v1  ;;  %v732_v3 = vmul.bf16 %v724_v28, %v691_v32  ;;  %v1181_v22 = vrot.slane %v1167_v60, %v2209_v7  ;;  %v1326_v23 = vcombine.high %v1754_v5, %v1754_v5  ;;  %v2366_v47 = vpop.permute.xlu0 %1890 }
  0xba   : > { %v630_v6 = vadd.f32 %v629_v62, %v605_v61  ;;  %v677_v24 = vcombine.low %v670_v0, %v674_v11  ;;  %v750_v12 = vrot.slane %v1851_v16, %v2235_v45  ;;  %v1863_v38 = vunpack.i.h.bf16 %v2293_v13 }
  0xbb   : > { %v738_v18 = vunpack.c.l.bf16 %v733_v4  ;;  %v2349_v17 = vpop.permute.xlu1 %1878  ;;  %v737_v21 = vunpack.c.l.bf16 %v732_v3  ;;  %v1874_v41 = vunpack.i.l.bf16 %v2341_v14  ;;  %v775_v50 = vrot.slane %v1857_v20, %v2235_v45 }
  0xbc   : > { %v655_v19 = vadd.f32 %v654_v46, %v630_v6  ;;  %v679_v39 = vmul.f32 %v677_v24, %v666_v10  ;;  %v1183_v51 = vpack.i.b16 %v1174_v9, %v1174_v9  ;;  %v1190_v53 = vpack.i.b16 %v1181_v22, %v1181_v22 }
  0xbd   : > { %v758_v25 = vrot.slane %v738_v18, %v2150_v40  ;;  %v783_v26 = vrot.slane %v738_v18, %v2135_v33  ;;  %v754_v48 = vrot.slane %v737_v21, %v2150_v40  ;;  %v779_v29 = vrot.slane %v737_v21, %v2135_v33 }
  0xbe   : > { %v804_v31 = vrot.slane %v737_v21, %v2138_v34  ;;  %v808_v36 = vrot.slane %v738_v18, %v2138_v34  ;;  %v829_v27 = vrot.slane %v737_v21, %v2178_v56  ;;  %v833_v44 = vrot.slane %v738_v18, %v2178_v56  ;;  %v1146_v18 = vpop.permute.xlu0 %1145 }
  0xbf   : > { %v761_v42 = vcombine.low %v754_v48, %v758_v25  ;;  %v786_v43 = vcombine.low %v779_v29, %v783_v26  ;;  %v2370_v28 = vrot.slane %v1754_v5, %v2209_v7  ;;  %v1869_v13 = vunpack.i.h.bf16 %v2311_v37  ;;  %v2383_v37 = vld.sshfl [vmem:[%s2534_s3 + $0x10] sm:$0x11 pattern:$0x75316420] }
  0xc0   : > { %v2364_v35 = vpop.permute.xlu1 %1884  ;;  %v680_v55 = vadd.f32 %v679_v39, %v655_v19  ;;  %v811_v58 = vcombine.low %v804_v31, %v808_v36  ;;  %v800_v8 = vrot.slane %v1863_v38, %v2235_v45  ;;  %v1880_v60 = vunpack.i.l.bf16 %v2349_v17 }
  0xc1   : > { %v763_v57 = vmul.f32 %v761_v42, %v750_v12  ;;  %v855_v61 = vrot.slane %v1874_v41, %v2235_v45  ;;  %v2377_v62 = vrot.slane %v1326_v23, %v2209_v7  ;;  %v788_v0 = vmul.f32 %v786_v43, %v775_v50 }
  0xc2   : > { %v836_v1 = vcombine.low %v829_v27, %v833_v44  ;;  %v1892_v32 = vunpack.i.l.bf16 %v2366_v47  ;;  %v1886_v4 = vunpack.i.l.bf16 %v2364_v35  ;;  %v1188_v5 = vrot.slane %v1183_v51, %v2150_v40 }
  0xc3   : > { %v764_v2 = vadd.f32 %v763_v57, %v680_v55  ;;  %v1195_v6 = vrot.slane %v1190_v53, %v2150_v40  ;;  %v1342_v3 = vpack.i.b16 %v2370_v28, %v2370_v28  ;;  %v825_v9 = vrot.slane %v1869_v13, %v2235_v45  ;;  %v2415_v13 = vpop.permute.xlu0 %1896 }
  0xc4   : > { %v987_v11 = vpop.permute.xlu1 %986  ;;  %v813_v16 = vmul.f32 %v811_v58, %v800_v8  ;;  %v1875_v46 = vunpack.i.h.bf16 %v2341_v14  ;;  %v1881_v20 = vunpack.i.h.bf16 %v2349_v17  ;;  %v891_v21 = vrot.slane %v1880_v60, %v2235_v45 }
  0xc5   : > { %v789_v10 = vadd.f32 %v788_v0, %v764_v2  ;;  %v1349_v22 = vpack.i.b16 %v2377_v62, %v2377_v62  ;;  %v1485_v23 = vcombine.high %v2383_v37, %v2383_v37  ;;  %v838_v19 = vmul.f32 %v836_v1, %v825_v9 }
  0xc6   : > { %v879_v25 = vmul.f32 %v2172_v54, %v855_v61  ;;  %v961_v26 = vrot.slane %v1892_v32, %v2235_v45  ;;  %v926_v14 = vrot.slane %v1886_v4, %v2235_v45  ;;  %v2405_v31 = vrot.slane %v2383_v37, %v2209_v7 }
  0xc7   : > { %v814_v24 = vadd.f32 %v813_v16, %v789_v10  ;;  %v1055_v36 = vrot.slane %v1875_v46, %v2235_v45  ;;  %v1080_v39 = vrot.slane %v1881_v20, %v2235_v45  ;;  %v914_v41 = vmul.f32 %v2162_v49, %v891_v21  ;;  %v2432_v20 = vpop.permute.xlu0 %1914 }
  0xc8   : > { %v989_v48 = vpop.permute.xlu1 %988  ;;  %v1887_v42 = vunpack.i.h.bf16 %v2364_v35  ;;  %v1893_v43 = vunpack.i.h.bf16 %v2366_v47  ;;  %v984_v44 = vmul.f32 %v2191_v63, %v961_v26  ;;  %v1898_v49 = vunpack.i.l.bf16 %v2415_v13 }
  0xc9   : > { %v991_v29 = vsel %vm990_vm4, %v987_v11, %v989_v48  ;;  %v996_v17 = vsel %vm990_vm4, %v989_v48, %v987_v11  ;;  %v839_v12 = vadd.f32 %v838_v19, %v814_v24 }
  0xca   : > { %v1037_v38 = vmul.bf16 %v2330_v59, %v991_v29  ;;  %v1038_v54 = vmul.bf16 %v2344_v15, %v996_v17  ;;  %v949_v59 = vmul.f32 %v2166_v52, %v926_v14  ;;  %v1130_v32 = vrot.slane %v1893_v43, %v2235_v45 }
  0xcb   : > { %v880_v27 = vadd.f32 %v879_v25, %v839_v12  ;;  %v1105_v21 = vrot.slane %v1887_v42, %v2235_v45  ;;  %v1214_v24 = vrot.slane %v1898_v49, %v2235_v45 }
  0xcc   : > { %v1042_v50 = vunpack.c.l.bf16 %v1037_v38  ;;  %v1043_v51 = vunpack.c.l.bf16 %v1038_v54  ;;  %v1148_v53 = vpop.permute.xlu1 %1147 }
  0xcd   : > { %v1150_v15 = vsel %vm1149_vm5, %v1146_v18, %v1148_v53  ;;  %v1155_v55 = vsel %vm1149_vm5, %v1148_v53, %v1146_v18  ;;  %v915_v57 = vadd.f32 %v914_v41, %v880_v27 }
  0xce   : > { %v1059_v35 = vrot.slane %v1042_v50, %v2150_v40  ;;  %v1063_v47 = vrot.slane %v1043_v51, %v2150_v40  ;;  %v1084_v63 = vrot.slane %v1042_v50, %v2135_v33  ;;  %v1088_v58 = vrot.slane %v1043_v51, %v2135_v33 }
  0xcf   : > { %v1109_v8 = vrot.slane %v1042_v50, %v2138_v34  ;;  %v1113_v60 = vrot.slane %v1043_v51, %v2138_v34  ;;  %v1134_v52 = vrot.slane %v1042_v50, %v2178_v56  ;;  %v950_v61 = vadd.f32 %v949_v59, %v915_v57 }
  0xd0   : > { %v1066_v0 = vcombine.low %v1059_v35, %v1063_v47  ;;  %v1138_v1 = vrot.slane %v1043_v51, %v2178_v56  ;;  %v1196_v2 = vmul.bf16 %v1188_v5, %v1150_v15  ;;  %v2429_v11 = vpop.permute.xlu1 %1902  ;;  %v1091_v37 = vcombine.low %v1084_v63, %v1088_v58 }
  0xd1   : > { %v1116_v4 = vcombine.low %v1109_v8, %v1113_v60  ;;  %v1197_v9 = vmul.bf16 %v1195_v6, %v1155_v55  ;;  %v985_v16 = vadd.f32 %v984_v44, %v950_v61  ;;  %v1499_v5 = vrot.slane %v1485_v23, %v2209_v7 }
  0xd2   : > { %v1068_v46 = vmul.f32 %v1066_v0, %v1055_v36  ;;  %v1141_v10 = vcombine.low %v1134_v52, %v1138_v1  ;;  %v1201_v18 = vunpack.c.l.bf16 %v1196_v2  ;;  %v1093_v25 = vmul.f32 %v1091_v37, %v1080_v39 }
  0xd3   : > { %v1202_v19 = vunpack.c.l.bf16 %v1197_v9  ;;  %v1904_v14 = vunpack.i.l.bf16 %v2429_v11  ;;  %v1916_v36 = vunpack.i.l.bf16 %v2432_v20  ;;  %v1118_v38 = vmul.f32 %v1116_v4, %v1105_v21 }
  0xd4   : > { %v1218_v26 = vrot.slane %v1201_v18, %v2150_v40  ;;  %v1069_v48 = vadd.f32 %v1068_v46, %v985_v16  ;;  %v1243_v29 = vrot.slane %v1201_v18, %v2135_v33  ;;  %v1143_v41 = vmul.f32 %v1141_v10, %v1130_v32 }
  0xd5   : > { %v1222_v6 = vrot.slane %v1202_v19, %v2150_v40  ;;  %v1247_v17 = vrot.slane %v1202_v19, %v2135_v33  ;;  %v2443_v12 = vpop.permute.xlu1 %1908  ;;  %v1293_v7 = vrot.slane %v1201_v18, %v2178_v56  ;;  %v1239_v39 = vrot.slane %v1904_v14, %v2235_v45 }
  0xd6   : > { %v1094_v54 = vadd.f32 %v1093_v25, %v1069_v48  ;;  %v1297_v42 = vrot.slane %v1202_v19, %v2178_v56  ;;  %v1910_v43 = vunpack.i.l.bf16 %v2443_v12  ;;  %v1268_v50 = vrot.slane %v1201_v18, %v2138_v34  ;;  %v1464_v18 = vpop.permute.xlu0 %1463 }
  0xd7   : > { %v1225_v23 = vcombine.low %v1218_v26, %v1222_v6  ;;  %v1250_v44 = vcombine.low %v1243_v29, %v1247_v17  ;;  %v1272_v51 = vrot.slane %v1202_v19, %v2138_v34  ;;  %v1347_v59 = vrot.slane %v1342_v3, %v2150_v40 }
  0xd8   : > { %v1119_v27 = vadd.f32 %v1118_v38, %v1094_v54  ;;  %v1264_v49 = vrot.slane %v1910_v43, %v2235_v45  ;;  %v1354_v57 = vrot.slane %v1349_v22, %v2150_v40  ;;  %v1899_v35 = vunpack.i.h.bf16 %v2415_v13 }
  0xd9   : > { %v1305_v53 = vpop.permute.xlu1 %1304  ;;  %v1227_v55 = vmul.f32 %v1225_v23, %v1214_v24  ;;  %v1289_v47 = vrot.slane %v1916_v36, %v2235_v45  ;;  %v1501_v63 = vpack.i.b16 %v2405_v31, %v2405_v31  ;;  %v1508_v58 = vpack.i.b16 %v1499_v5, %v1499_v5 }
  0xda   : > { %v1144_v15 = vadd.f32 %v1143_v41, %v1119_v27  ;;  %v1252_v28 = vmul.f32 %v1250_v44, %v1239_v39  ;;  %v1300_v3 = vcombine.low %v1293_v7, %v1297_v42  ;;  %v1275_v60 = vcombine.low %v1268_v50, %v1272_v51  ;;  %v1524_v27 = vpop.permute.xlu0 %1523 }
  0xdb   : > { %v1506_v13 = vrot.slane %v1501_v63, %v2150_v40  ;;  %v1373_v32 = vrot.slane %v1899_v35, %v2235_v45  ;;  %v1513_v4 = vrot.slane %v1508_v58, %v2150_v40  ;;  %v1905_v9 = vunpack.i.h.bf16 %v2429_v11 }
  0xdc   : > { %v1228_v8 = vadd.f32 %v1227_v55, %v1144_v15  ;;  %v1277_v0 = vmul.f32 %v1275_v60, %v1264_v49  ;;  %v1302_v31 = vmul.f32 %v1300_v3, %v1289_v47  ;;  %v1917_v16 = vunpack.i.h.bf16 %v2432_v20 }
  0xdd   : > { %v1307_v52 = vpop.permute.xlu1 %1306  ;;  %v1911_v19 = vunpack.i.h.bf16 %v2443_v12  ;;  %v1398_v41 = vrot.slane %v1905_v9, %v2235_v45 }
  0xde   : > { %v1253_v61 = vadd.f32 %v1252_v28, %v1228_v8  ;;  %v1309_v1 = vsel %vm1308_vm6, %v1305_v53, %v1307_v52  ;;  %v1314_v62 = vsel %vm1308_vm6, %v1307_v52, %v1305_v53  ;;  %v1448_v7 = vrot.slane %v1917_v16, %v2235_v45 }
  0xdf   : > { %v1355_v22 = vmul.bf16 %v1347_v59, %v1309_v1  ;;  %v1356_v2 = vmul.bf16 %v1354_v57, %v1314_v62  ;;  %v1423_v50 = vrot.slane %v1911_v19, %v2235_v45  ;;  %v1532_v59 = vrot.slane %v1524_v27, %v2235_v45 }
  0xe0   : > { %v1278_v37 = vadd.f32 %v1277_v0, %v1253_v61 }
  0xe1   : > { %v1360_v46 = vunpack.c.l.bf16 %v1355_v22  ;;  %v1361_v10 = vunpack.c.l.bf16 %v1356_v2  ;;  %v1466_v21 = vpop.permute.xlu1 %1465  ;;  %v1599_v22 = vpop.permute.xlu0 %1598 }
  0xe2   : > { %v1303_v24 = vadd.f32 %v1302_v31, %v1278_v37  ;;  %v1468_v5 = vsel %vm1467_vm7, %v1464_v18, %v1466_v21  ;;  %v1473_v25 = vsel %vm1467_vm7, %v1466_v21, %v1464_v18  ;;  %v1607_v37 = vrot.slane %v1599_v22, %v2235_v45 }
  0xe3   : > { %v1377_v26 = vrot.slane %v1360_v46, %v2150_v40  ;;  %v1381_v48 = vrot.slane %v1361_v10, %v2150_v40  ;;  %v1402_v14 = vrot.slane %v1360_v46, %v2135_v33  ;;  %v1406_v6 = vrot.slane %v1361_v10, %v2135_v33 }
  0xe4   : > { %v1427_v11 = vrot.slane %v1360_v46, %v2138_v34  ;;  %v1431_v20 = vrot.slane %v1361_v10, %v2138_v34  ;;  %v1452_v29 = vrot.slane %v1360_v46, %v2178_v56  ;;  %v1456_v17 = vrot.slane %v1361_v10, %v2178_v56 }
  0xe5   : > { %v1384_v36 = vcombine.low %v1377_v26, %v1381_v48  ;;  %v1409_v12 = vcombine.low %v1402_v14, %v1406_v6  ;;  %v1514_v38 = vmul.bf16 %v1506_v13, %v1468_v5  ;;  %v1515_v54 = vmul.bf16 %v1513_v4, %v1473_v25  ;;  %v1549_v23 = vpop.permute.xlu1 %1548 }
  0xe6   : > { %v1434_v43 = vcombine.low %v1427_v11, %v1431_v20  ;;  %v1459_v53 = vcombine.low %v1452_v29, %v1456_v17  ;;  %v1557_v62 = vrot.slane %v1549_v23, %v2235_v45 }
  0xe7   : > { %v1519_v39 = vunpack.c.l.bf16 %v1514_v38  ;;  %v1520_v42 = vunpack.c.l.bf16 %v1515_v54  ;;  %v1386_v44 = vmul.f32 %v1384_v36, %v1373_v32  ;;  %v1411_v51 = vmul.f32 %v1409_v12, %v1398_v41 }
  0xe8   : > { %v1436_v8 = vmul.f32 %v1434_v43, %v1423_v50  ;;  %v1461_v1 = vmul.f32 %v1459_v53, %v1448_v7 }
  0xe9   : > { %v1536_v15 = vrot.slane %v1519_v39, %v2150_v40  ;;  %v1540_v55 = vrot.slane %v1520_v42, %v2150_v40  ;;  %v1387_v49 = vadd.f32 %v1386_v44, %v1303_v24  ;;  %v1561_v57 = vrot.slane %v1519_v39, %v2135_v33 }
  0xea   : > { %v1565_v35 = vrot.slane %v1520_v42, %v2135_v33  ;;  %v1611_v47 = vrot.slane %v1519_v39, %v2178_v56  ;;  %v1615_v63 = vrot.slane %v1520_v42, %v2178_v56  ;;  %v1586_v58 = vrot.slane %v1519_v39, %v2138_v34  ;;  %v1574_v0 = vpop.permute.xlu1 %1573 }
  0xeb   : > { %v1543_v28 = vcombine.low %v1536_v15, %v1540_v55  ;;  %v1412_v3 = vadd.f32 %v1411_v51, %v1387_v49  ;;  %v1590_v60 = vrot.slane %v1520_v42, %v2138_v34  ;;  %v1582_v56 = vrot.slane %v1574_v0, %v2235_v45 }
  0xec   : > { %v1568_v52 = vcombine.low %v1561_v57, %v1565_v35  ;;  %v1618_v61 = vcombine.low %v1611_v47, %v1615_v63 }
  0xed   : > { %v1437_v40 = vadd.f32 %v1436_v8, %v1412_v3  ;;  %v1593_v33 = vcombine.low %v1586_v58, %v1590_v60  ;;  %v1545_v13 = vmul.f32 %v1543_v28, %v1532_v59 }
  0xee   : > { %v1570_v31 = vmul.f32 %v1568_v52, %v1557_v62  ;;  %v1620_v16 = vmul.f32 %v1618_v61, %v1607_v37 }
  0xef   : > { %v1462_v2 = vadd.f32 %v1461_v1, %v1437_v40  ;;  %v1626_v34 = vpop.permute.xlu1 %1625  ;;  %v1595_v9 = vmul.f32 %v1593_v33, %v1582_v56 }
  0xf0   : > { %v1633_v10 = vrot.slane %v1626_v34, %v2235_v45 }
  0xf1   : > { %v1546_v32 = vadd.f32 %v1545_v13, %v1462_v2 }
  0xf3   : > { %v1571_v4 = vadd.f32 %v1570_v31, %v1546_v32 }
  0xf5   : > { %v1596_v46 = vadd.f32 %v1595_v9, %v1571_v4 }
  0xf7   : > { %v1621_v18 = vadd.f32 %v1620_v16, %v1596_v46 }
  0xf9   : > { %v1635_v21 = vadd.f32 %v1633_v10, %v1621_v18 }
  0xfb   : > { %v1636_v19 = vmax.f32 %v1635_v21, 0.0 }
  0xfd   : > { %v1637_v24 = vadd.f32 %v1636_v19, %v2132_v30 }
  0xff   : > { %v1639_v5 = vcombine.high %v1637_v24, %v1637_v24 }
 0x101   : > { %v1759_v25 = vpack.c.bf16 %v1639_v5, %v1637_v24 }
 0x103   : > { %1760 = vst.sshfl [vmem:[%s190_s28] sm:$0x33 pattern:$0x76325410] %v1759_v25 }
 0x104   : > { %1937 = shalt.err (!%p1934_p3)
}
 0x105   : > { %s1938_s11 = scalar_lea.hbm %s1668_s6, 64  ;;  %s1942_s14 = scalar_lea.hbm %s2535_s4, 128 }
 0x106   : > { %p1939_p4 = scmp.ne.s32.totalorder %s1668_s6, %s1938_s11  ;;  %p1943_p9 = scmp.lt.s32.totalorder %s1668_s6, %s2535_s4 }
 0x107   : > { %p1944_p10 = scmp.lt.s32.totalorder %s1942_s14, %s1938_s11 }
 0x108   : > { %p1940_p7 = pnand %p1939_p4, %p2065_p5 }
 0x109   : > { %p1945_p11 = por %p1944_p10, %p1943_p9 }
 0x10a   : > { %p1941_p8 = pneg %p1940_p7 }
 0x10c   : > { %p1946_p12 = pnand %p1945_p11, %p1941_p8 }
 0x10e   : > { %1949 = shalt.err (!%p1946_p12)
}
 0x10f   : > { %1768 = dma.vmem_to_hbm [thread:$0]  (%p2065_p5), %s1671_s29, 64, %s1668_s6, %s1656_s7  }
 0x110 PF: > { %p1774_p13 = scmp.ge.s32.totalorder %s1984_s18, 2  ;;  %s1682_s23 = sand.u32 1, %s1972_s15  }
 0x111   : > { %s1683_s27 = scalar_lea.sflag [#allocation3], %s1682_s23 }
 0x112   : > { %p1771_p0 = pnand %p1774_p13, %p2069_p6 }
 0x114   : > { %p1772_p1 = pneg %p1771_p0 }
 0x116   : > { %1967 = dma.done.wait (%p1772_p1), %s1683_s27, 64  }
 0x117   : > { %1969 = vsyncadd (%p1772_p1), %s1683_s27, 4294967232  ;;  %p14_p2 = scmp.ge.s32.totalorder %s2052_s21, 4   ;;  %s2538_s15 = smov %s1976_s16 }
 0x118   : > { %s2539_s16 = smov %s1980_s17  ;;  %s2540_s17 = smov %s2063_s24 }
 0x119   : > { %s2541_s18 = smov %s2052_s21  ;;  %16 = sbr.rel (!%p14_p2) target bundleno = 3 (0x3), region = 86 }
 0x11e   :  { %1688 = vsyncpa [#allocation3], 1 }
 0x11f   :  { %1690 = vsyncpa [#allocation3 + $0x1], 1 }

</bundles_post_ra>
